<compile_context>
chip_gen: v7x
topology: tpu7x:2x2x1
jax: 0.10.0
libtpu: 0.0.40
codegen_flags: <defaults>
</compile_context>

<pallas_src>
import functools

import jax
import jax.numpy as jnp
from jax.experimental import pallas as pl
from jax.experimental.pallas import tpu as pltpu


# ----------------------------------------------------------------------------
# Fused 3x3 conv (valid, stride 1 or 2) + folded BatchNorm + ReLU kernel
# ----------------------------------------------------------------------------

def _conv3x3_bn_relu_kernel(x_ref, w_ref, b_ref, o_ref, *, stride, ho, wo, cin):
    """One batch image per program.

    x_ref : stride 1 -> (1, H, W,    Cin)
            stride 2 -> (1, H, W//2, 2*Cin)   (even/odd-column packed view of the input)
    w_ref : (9*Cin, Cout)  bf16, rows ordered (dy, dx, ci), BN scale folded in
    b_ref : (1, Cout)      f32, folded BN shift
    o_ref : (1, ho, wo, Cout)
    """
    wmat = w_ref[...]          # resident weight tile, hoisted out of the row loop
    bias = b_ref[...]

    for oy in range(ho):       # small static trip count -> fully unrolled
        parts = []
        for dy in range(3):
            iy = stride * oy + dy
            if stride == 1:
                row = x_ref[0, iy]                          # (W, Cin)
                parts.append(row[0:wo, :])                  # dx = 0
                parts.append(row[1:wo + 1, :])              # dx = 1
                parts.append(row[2:wo + 2, :])              # dx = 2
            else:  # stride == 2, columns packed pairwise into the channel (lane) dim
                rowp = x_ref[0, iy]                         # (W//2, 2*Cin)
                parts.append(rowp[0:wo, 0:2 * cin])         # dx = 0,1 -> cols 2ox, 2ox+1
                parts.append(rowp[1:wo + 1, 0:cin])         # dx = 2   -> col 2ox+2
        lhs = jnp.concatenate(parts, axis=-1)               # (wo, 9*Cin), (dy, dx, ci) order
        acc = jnp.dot(lhs.astype(jnp.bfloat16), wmat,
                      preferred_element_type=jnp.float32)   # MXU, f32 accumulate
        y = jnp.maximum(acc + bias, 0.0)                    # folded BN shift + ReLU epilogue
        o_ref[0, oy] = y.astype(o_ref.dtype)


def conv3x3_bn_relu(x, w_folded, b_folded, *, stride, out_dtype):
    """x: (N, H, W, Cin) NHWC. w_folded: (9*Cin, Cout) bf16. b_folded: (1, Cout) f32."""
    n, h, wdim, cin = x.shape
    cout = w_folded.shape[1]
    ho = (h - 3) // stride + 1
    wo = (wdim - 3) // stride + 1

    if stride == 2:
        if wdim % 2:  # pad one never-read column so the even/odd packing view exists
            x = jnp.pad(x, ((0, 0), (0, 0), (0, 1), (0, 0)))
            wdim += 1
        # Free, contiguous reshape: channel dim now packs (even col, odd col) pairs.
        x = x.reshape(n, h, wdim // 2, 2 * cin)
    elif stride != 1:
        raise ValueError("stride must be 1 or 2")

    _, _, wx, cx = x.shape
    kernel = functools.partial(_conv3x3_bn_relu_kernel,
                               stride=stride, ho=ho, wo=wo, cin=cin)
    return pl.pallas_call(
        kernel,
        out_shape=jax.ShapeDtypeStruct((n, ho, wo, cout), out_dtype),
        grid=(n,),
        in_specs=[
            pl.BlockSpec((1, h, wx, cx), lambda i: (i, 0, 0, 0)),
            pl.BlockSpec((9 * cin, cout), lambda i: (0, 0)),   # stays VMEM-resident
            pl.BlockSpec((1, cout), lambda i: (0, 0)),
        ],
        out_specs=pl.BlockSpec((1, ho, wo, cout), lambda i: (i, 0, 0, 0)),
        compiler_params=pltpu.CompilerParams(dimension_semantics=("parallel",)),
    )(x, w_folded, b_folded)


# ----------------------------------------------------------------------------
# Parameters: conv weights with eval-mode BatchNorm folded in
# ----------------------------------------------------------------------------

def _fold_conv_bn(key, cin, cout, eps=1e-5):
    kw, kg, kb, km, kv = jax.random.split(key, 5)
    w = jax.random.normal(kw, (3, 3, cin, cout), jnp.float32) / jnp.sqrt(9.0 * cin)
    gamma = jax.random.uniform(kg, (cout,), minval=0.5, maxval=1.5)
    beta = jax.random.normal(kb, (cout,)) * 0.1
    mean = jax.random.normal(km, (cout,)) * 0.1
    var = jax.random.uniform(kv, (cout,), minval=0.5, maxval=1.5)
    scale = gamma / jnp.sqrt(var + eps)          # BN: y = scale * x + shift
    shift = beta - mean * scale
    w_folded = (w * scale[None, None, None, :]).reshape(9 * cin, cout).astype(jnp.bfloat16)
    b_folded = shift.reshape(1, cout).astype(jnp.float32)
    return w_folded, b_folded


def init_params(key, in_channels, out_channels):
    k1, k2 = jax.random.split(key)
    mid = out_channels // 2
    w1, b1 = _fold_conv_bn(k1, in_channels, mid)
    w2, b2 = _fold_conv_bn(k2, mid, out_channels)
    return {"w1": w1, "b1": b1, "w2": w2, "b2": b2}


# ----------------------------------------------------------------------------
# Forward pass (glue = layout transposes; all compute in the two fused kernels)
# ----------------------------------------------------------------------------

def double_conv_block_forward(x_nchw, params):
    # NCHW (PyTorch layout) -> NHWC so channels map to the TPU lane axis.
    x = jnp.transpose(x_nchw, (0, 2, 3, 1)).astype(jnp.float32)
    # Conv(3x3, s=2) + BN + ReLU ; intermediate kept in bf16 to halve HBM traffic.
    y = conv3x3_bn_relu(x, params["w1"], params["b1"], stride=2, out_dtype=jnp.bfloat16)
    # Conv(3x3, s=1) + BN + ReLU
    z = conv3x3_bn_relu(y, params["w2"], params["b2"], stride=1, out_dtype=jnp.float32)
    return jnp.transpose(z, (0, 3, 1, 2))        # back to NCHW


# ----------------------------------------------------------------------------
# Main
# ----------------------------------------------------------------------------

if __name__ == "__main__":
    key = jax.random.PRNGKey(0)
    kx, kp = jax.random.split(key)

    N, Cin, H, W = 2, 4, 16, 16
    Cout = 32

    x = jax.random.normal(kx, (N, Cin, H, W), dtype=jnp.float32)
    params = init_params(kp, Cin, Cout)

    fwd = jax.jit(double_conv_block_forward)
    out = jax.block_until_ready(fwd(x, params))

    Ho1, Wo1 = (H - 3) // 2 + 1, (W - 3) // 2 + 1     # conv1: valid, stride 2
    Ho2, Wo2 = Ho1 - 2, Wo1 - 2                        # conv2: valid, stride 1
    assert out.shape == (N, Cout, Ho2, Wo2), out.shape
    assert bool(jnp.all(jnp.isfinite(out)))
    print("KERNEL_OK")
</pallas_src>

<mosaic_0001>
module attributes {stable_mosaic.version = 11 : i64} {
  func.func @_conv3x3_bn_relu_kernel(%arg0: i32, %arg1: memref<1x16x8x8xf32, #tpu.memory_space<vmem>>, %arg2: memref<36x16xbf16, #tpu.memory_space<vmem>>, %arg3: memref<1x16xf32, #tpu.memory_space<vmem>>, %arg4: memref<1x7x7x16xbf16, #tpu.memory_space<vmem>>) attributes {dimension_semantics = [#tpu.dimension_semantics<parallel>], iteration_bounds = array<i64: 2>, scalar_prefetch = 0 : i64, scratch_operands = 0 : i64, tpu.core_type = #tpu.core_type<tc>, window_params = [{transform_indices = @transform_0, window_bounds = array<i64: 1, 16, 8, 8>}, {pipeline_mode = #tpu.pipeline_mode<synchronous>, transform_indices = @transform_1, window_bounds = array<i64: 36, 16>}, {pipeline_mode = #tpu.pipeline_mode<synchronous>, transform_indices = @transform_2, window_bounds = array<i64: 1, 16>}, {transform_indices = @transform_3, window_bounds = array<i64: 1, 7, 7, 16>}]} {
    %c0 = arith.constant 0 : index
    %c0_0 = arith.constant 0 : index
    %0 = vector.load %arg2[%c0, %c0_0] : memref<36x16xbf16, #tpu.memory_space<vmem>>, vector<36x16xbf16>
    %c0_1 = arith.constant 0 : index
    %c0_2 = arith.constant 0 : index
    %1 = vector.load %arg3[%c0_1, %c0_2] : memref<1x16xf32, #tpu.memory_space<vmem>>, vector<1x16xf32>
    %c0_3 = arith.constant 0 : index
    %c0_4 = arith.constant 0 : index
    %c0_5 = arith.constant 0 : index
    %c0_6 = arith.constant 0 : index
    %2 = vector.load %arg1[%c0_3, %c0_4, %c0_5, %c0_6] : memref<1x16x8x8xf32, #tpu.memory_space<vmem>>, vector<1x1x8x8xf32>
    %3 = vector.shape_cast %2 : vector<1x1x8x8xf32> to vector<8x8xf32>
    %4 = vector.extract_strided_slice %3 {offsets = [0, 0], sizes = [7, 8], strides = [1, 1]} : vector<8x8xf32> to vector<7x8xf32>
    %5 = vector.extract_strided_slice %3 {offsets = [1, 0], sizes = [7, 4], strides = [1, 1]} : vector<8x8xf32> to vector<7x4xf32>
    %c0_7 = arith.constant 0 : index
    %c1 = arith.constant 1 : index
    %c0_8 = arith.constant 0 : index
    %c0_9 = arith.constant 0 : index
    %6 = vector.load %arg1[%c0_7, %c1, %c0_8, %c0_9] : memref<1x16x8x8xf32, #tpu.memory_space<vmem>>, vector<1x1x8x8xf32>
    %7 = vector.shape_cast %6 : vector<1x1x8x8xf32> to vector<8x8xf32>
    %8 = vector.extract_strided_slice %7 {offsets = [0, 0], sizes = [7, 8], strides = [1, 1]} : vector<8x8xf32> to vector<7x8xf32>
    %9 = vector.extract_strided_slice %7 {offsets = [1, 0], sizes = [7, 4], strides = [1, 1]} : vector<8x8xf32> to vector<7x4xf32>
    %c0_10 = arith.constant 0 : index
    %c2 = arith.constant 2 : index
    %c0_11 = arith.constant 0 : index
    %c0_12 = arith.constant 0 : index
    %10 = vector.load %arg1[%c0_10, %c2, %c0_11, %c0_12] : memref<1x16x8x8xf32, #tpu.memory_space<vmem>>, vector<1x1x8x8xf32>
    %11 = vector.shape_cast %10 : vector<1x1x8x8xf32> to vector<8x8xf32>
    %12 = vector.extract_strided_slice %11 {offsets = [0, 0], sizes = [7, 8], strides = [1, 1]} : vector<8x8xf32> to vector<7x8xf32>
    %13 = vector.extract_strided_slice %11 {offsets = [1, 0], sizes = [7, 4], strides = [1, 1]} : vector<8x8xf32> to vector<7x4xf32>
    %14 = tpu.concatenate %4, %5, %8, %9, %12, %13 in 1 : vector<7x8xf32>, vector<7x4xf32>, vector<7x8xf32>, vector<7x4xf32>, vector<7x8xf32>, vector<7x4xf32> -> vector<7x36xf32>
    %15 = arith.truncf %14 : vector<7x36xf32> to vector<7x36xbf16>
    %cst = arith.constant dense<0.000000e+00> : vector<7x16xf32>
    %16 = tpu.matmul %15, %0, %cst {dimension_numbers = #tpu.dot_dimension_numbers<[1], [0], [0], [1], [0, 0, 1, 1], [], []>} : vector<7x36xbf16>, vector<36x16xbf16>, vector<7x16xf32> -> vector<7x16xf32>
    %17 = vector.broadcast %1 : vector<1x16xf32> to vector<7x16xf32>
    %18 = arith.addf %16, %17 : vector<7x16xf32>
    %cst_13 = arith.constant 0.000000e+00 : f32
    %19 = vector.broadcast %cst_13 : f32 to vector<7x16xf32>
    %20 = arith.maximumf %18, %19 : vector<7x16xf32>
    %21 = arith.truncf %20 : vector<7x16xf32> to vector<7x16xbf16>
    %c0_14 = arith.constant 0 : index
    %c0_15 = arith.constant 0 : index
    %c0_16 = arith.constant 0 : index
    %c0_17 = arith.constant 0 : index
    %22 = vector.load %arg4[%c0_14, %c0_15, %c0_16, %c0_17] : memref<1x7x7x16xbf16, #tpu.memory_space<vmem>>, vector<1x1x7x16xbf16>
    %23 = vector.shape_cast %22 : vector<1x1x7x16xbf16> to vector<7x16xbf16>
    %24 = vector.shape_cast %21 : vector<7x16xbf16> to vector<1x1x7x16xbf16>
    tpu.vector_store %arg4[%c0_14, %c0_15, %c0_16, %c0_17], %24 {strides = array<i32>} : memref<1x7x7x16xbf16, #tpu.memory_space<vmem>>, vector<1x1x7x16xbf16>,
    %c0_18 = arith.constant 0 : index
    %c2_19 = arith.constant 2 : index
    %c0_20 = arith.constant 0 : index
    %c0_21 = arith.constant 0 : index
    %25 = vector.load %arg1[%c0_18, %c2_19, %c0_20, %c0_21] : memref<1x16x8x8xf32, #tpu.memory_space<vmem>>, vector<1x1x8x8xf32>
    %26 = vector.shape_cast %25 : vector<1x1x8x8xf32> to vector<8x8xf32>
    %27 = vector.extract_strided_slice %26 {offsets = [0, 0], sizes = [7, 8], strides = [1, 1]} : vector<8x8xf32> to vector<7x8xf32>
    %28 = vector.extract_strided_slice %26 {offsets = [1, 0], sizes = [7, 4], strides = [1, 1]} : vector<8x8xf32> to vector<7x4xf32>
    %c0_22 = arith.constant 0 : index
    %c3 = arith.constant 3 : index
    %c0_23 = arith.constant 0 : index
    %c0_24 = arith.constant 0 : index
    %29 = vector.load %arg1[%c0_22, %c3, %c0_23, %c0_24] : memref<1x16x8x8xf32, #tpu.memory_space<vmem>>, vector<1x1x8x8xf32>
    %30 = vector.shape_cast %29 : vector<1x1x8x8xf32> to vector<8x8xf32>
    %31 = vector.extract_strided_slice %30 {offsets = [0, 0], sizes = [7, 8], strides = [1, 1]} : vector<8x8xf32> to vector<7x8xf32>
    %32 = vector.extract_strided_slice %30 {offsets = [1, 0], sizes = [7, 4], strides = [1, 1]} : vector<8x8xf32> to vector<7x4xf32>
    %c0_25 = arith.constant 0 : index
    %c4 = arith.constant 4 : index
    %c0_26 = arith.constant 0 : index
    %c0_27 = arith.constant 0 : index
    %33 = vector.load %arg1[%c0_25, %c4, %c0_26, %c0_27] : memref<1x16x8x8xf32, #tpu.memory_space<vmem>>, vector<1x1x8x8xf32>
    %34 = vector.shape_cast %33 : vector<1x1x8x8xf32> to vector<8x8xf32>
    %35 = vector.extract_strided_slice %34 {offsets = [0, 0], sizes = [7, 8], strides = [1, 1]} : vector<8x8xf32> to vector<7x8xf32>
    %36 = vector.extract_strided_slice %34 {offsets = [1, 0], sizes = [7, 4], strides = [1, 1]} : vector<8x8xf32> to vector<7x4xf32>
    %37 = tpu.concatenate %27, %28, %31, %32, %35, %36 in 1 : vector<7x8xf32>, vector<7x4xf32>, vector<7x8xf32>, vector<7x4xf32>, vector<7x8xf32>, vector<7x4xf32> -> vector<7x36xf32>
    %38 = arith.truncf %37 : vector<7x36xf32> to vector<7x36xbf16>
    %cst_28 = arith.constant dense<0.000000e+00> : vector<7x16xf32>
    %39 = tpu.matmul %38, %0, %cst_28 {dimension_numbers = #tpu.dot_dimension_numbers<[1], [0], [0], [1], [0, 0, 1, 1], [], []>} : vector<7x36xbf16>, vector<36x16xbf16>, vector<7x16xf32> -> vector<7x16xf32>
    %40 = vector.broadcast %1 : vector<1x16xf32> to vector<7x16xf32>
    %41 = arith.addf %39, %40 : vector<7x16xf32>
    %cst_29 = arith.constant 0.000000e+00 : f32
    %42 = vector.broadcast %cst_29 : f32 to vector<7x16xf32>
    %43 = arith.maximumf %41, %42 : vector<7x16xf32>
    %44 = arith.truncf %43 : vector<7x16xf32> to vector<7x16xbf16>
    %c0_30 = arith.constant 0 : index
    %c1_31 = arith.constant 1 : index
    %c0_32 = arith.constant 0 : index
    %c0_33 = arith.constant 0 : index
    %45 = vector.load %arg4[%c0_30, %c1_31, %c0_32, %c0_33] : memref<1x7x7x16xbf16, #tpu.memory_space<vmem>>, vector<1x1x7x16xbf16>
    %46 = vector.shape_cast %45 : vector<1x1x7x16xbf16> to vector<7x16xbf16>
    %47 = vector.shape_cast %44 : vector<7x16xbf16> to vector<1x1x7x16xbf16>
    tpu.vector_store %arg4[%c0_30, %c1_31, %c0_32, %c0_33], %47 {strides = array<i32>} : memref<1x7x7x16xbf16, #tpu.memory_space<vmem>>, vector<1x1x7x16xbf16>,
    %c0_34 = arith.constant 0 : index
    %c4_35 = arith.constant 4 : index
    %c0_36 = arith.constant 0 : index
    %c0_37 = arith.constant 0 : index
    %48 = vector.load %arg1[%c0_34, %c4_35, %c0_36, %c0_37] : memref<1x16x8x8xf32, #tpu.memory_space<vmem>>, vector<1x1x8x8xf32>
    %49 = vector.shape_cast %48 : vector<1x1x8x8xf32> to vector<8x8xf32>
    %50 = vector.extract_strided_slice %49 {offsets = [0, 0], sizes = [7, 8], strides = [1, 1]} : vector<8x8xf32> to vector<7x8xf32>
    %51 = vector.extract_strided_slice %49 {offsets = [1, 0], sizes = [7, 4], strides = [1, 1]} : vector<8x8xf32> to vector<7x4xf32>
    %c0_38 = arith.constant 0 : index
    %c5 = arith.constant 5 : index
    %c0_39 = arith.constant 0 : index
    %c0_40 = arith.constant 0 : index
    %52 = vector.load %arg1[%c0_38, %c5, %c0_39, %c0_40] : memref<1x16x8x8xf32, #tpu.memory_space<vmem>>, vector<1x1x8x8xf32>
    %53 = vector.shape_cast %52 : vector<1x1x8x8xf32> to vector<8x8xf32>
    %54 = vector.extract_strided_slice %53 {offsets = [0, 0], sizes = [7, 8], strides = [1, 1]} : vector<8x8xf32> to vector<7x8xf32>
    %55 = vector.extract_strided_slice %53 {offsets = [1, 0], sizes = [7, 4], strides = [1, 1]} : vector<8x8xf32> to vector<7x4xf32>
    %c0_41 = arith.constant 0 : index
    %c6 = arith.constant 6 : index
    %c0_42 = arith.constant 0 : index
    %c0_43 = arith.constant 0 : index
    %56 = vector.load %arg1[%c0_41, %c6, %c0_42, %c0_43] : memref<1x16x8x8xf32, #tpu.memory_space<vmem>>, vector<1x1x8x8xf32>
    %57 = vector.shape_cast %56 : vector<1x1x8x8xf32> to vector<8x8xf32>
    %58 = vector.extract_strided_slice %57 {offsets = [0, 0], sizes = [7, 8], strides = [1, 1]} : vector<8x8xf32> to vector<7x8xf32>
    %59 = vector.extract_strided_slice %57 {offsets = [1, 0], sizes = [7, 4], strides = [1, 1]} : vector<8x8xf32> to vector<7x4xf32>
    %60 = tpu.concatenate %50, %51, %54, %55, %58, %59 in 1 : vector<7x8xf32>, vector<7x4xf32>, vector<7x8xf32>, vector<7x4xf32>, vector<7x8xf32>, vector<7x4xf32> -> vector<7x36xf32>
    %61 = arith.truncf %60 : vector<7x36xf32> to vector<7x36xbf16>
    %cst_44 = arith.constant dense<0.000000e+00> : vector<7x16xf32>
    %62 = tpu.matmul %61, %0, %cst_44 {dimension_numbers = #tpu.dot_dimension_numbers<[1], [0], [0], [1], [0, 0, 1, 1], [], []>} : vector<7x36xbf16>, vector<36x16xbf16>, vector<7x16xf32> -> vector<7x16xf32>
    %63 = vector.broadcast %1 : vector<1x16xf32> to vector<7x16xf32>
    %64 = arith.addf %62, %63 : vector<7x16xf32>
    %cst_45 = arith.constant 0.000000e+00 : f32
    %65 = vector.broadcast %cst_45 : f32 to vector<7x16xf32>
    %66 = arith.maximumf %64, %65 : vector<7x16xf32>
    %67 = arith.truncf %66 : vector<7x16xf32> to vector<7x16xbf16>
    %c0_46 = arith.constant 0 : index
    %c2_47 = arith.constant 2 : index
    %c0_48 = arith.constant 0 : index
    %c0_49 = arith.constant 0 : index
    %68 = vector.load %arg4[%c0_46, %c2_47, %c0_48, %c0_49] : memref<1x7x7x16xbf16, #tpu.memory_space<vmem>>, vector<1x1x7x16xbf16>
    %69 = vector.shape_cast %68 : vector<1x1x7x16xbf16> to vector<7x16xbf16>
    %70 = vector.shape_cast %67 : vector<7x16xbf16> to vector<1x1x7x16xbf16>
    tpu.vector_store %arg4[%c0_46, %c2_47, %c0_48, %c0_49], %70 {strides = array<i32>} : memref<1x7x7x16xbf16, #tpu.memory_space<vmem>>, vector<1x1x7x16xbf16>,
    %c0_50 = arith.constant 0 : index
    %c6_51 = arith.constant 6 : index
    %c0_52 = arith.constant 0 : index
    %c0_53 = arith.constant 0 : index
    %71 = vector.load %arg1[%c0_50, %c6_51, %c0_52, %c0_53] : memref<1x16x8x8xf32, #tpu.memory_space<vmem>>, vector<1x1x8x8xf32>
    %72 = vector.shape_cast %71 : vector<1x1x8x8xf32> to vector<8x8xf32>
    %73 = vector.extract_strided_slice %72 {offsets = [0, 0], sizes = [7, 8], strides = [1, 1]} : vector<8x8xf32> to vector<7x8xf32>
    %74 = vector.extract_strided_slice %72 {offsets = [1, 0], sizes = [7, 4], strides = [1, 1]} : vector<8x8xf32> to vector<7x4xf32>
    %c0_54 = arith.constant 0 : index
    %c7 = arith.constant 7 : index
    %c0_55 = arith.constant 0 : index
    %c0_56 = arith.constant 0 : index
    %75 = vector.load %arg1[%c0_54, %c7, %c0_55, %c0_56] : memref<1x16x8x8xf32, #tpu.memory_space<vmem>>, vector<1x1x8x8xf32>
    %76 = vector.shape_cast %75 : vector<1x1x8x8xf32> to vector<8x8xf32>
    %77 = vector.extract_strided_slice %76 {offsets = [0, 0], sizes = [7, 8], strides = [1, 1]} : vector<8x8xf32> to vector<7x8xf32>
    %78 = vector.extract_strided_slice %76 {offsets = [1, 0], sizes = [7, 4], strides = [1, 1]} : vector<8x8xf32> to vector<7x4xf32>
    %c0_57 = arith.constant 0 : index
    %c8 = arith.constant 8 : index
    %c0_58 = arith.constant 0 : index
    %c0_59 = arith.constant 0 : index
    %79 = vector.load %arg1[%c0_57, %c8, %c0_58, %c0_59] : memref<1x16x8x8xf32, #tpu.memory_space<vmem>>, vector<1x1x8x8xf32>
    %80 = vector.shape_cast %79 : vector<1x1x8x8xf32> to vector<8x8xf32>
    %81 = vector.extract_strided_slice %80 {offsets = [0, 0], sizes = [7, 8], strides = [1, 1]} : vector<8x8xf32> to vector<7x8xf32>
    %82 = vector.extract_strided_slice %80 {offsets = [1, 0], sizes = [7, 4], strides = [1, 1]} : vector<8x8xf32> to vector<7x4xf32>
    %83 = tpu.concatenate %73, %74, %77, %78, %81, %82 in 1 : vector<7x8xf32>, vector<7x4xf32>, vector<7x8xf32>, vector<7x4xf32>, vector<7x8xf32>, vector<7x4xf32> -> vector<7x36xf32>
    %84 = arith.truncf %83 : vector<7x36xf32> to vector<7x36xbf16>
    %cst_60 = arith.constant dense<0.000000e+00> : vector<7x16xf32>
    %85 = tpu.matmul %84, %0, %cst_60 {dimension_numbers = #tpu.dot_dimension_numbers<[1], [0], [0], [1], [0, 0, 1, 1], [], []>} : vector<7x36xbf16>, vector<36x16xbf16>, vector<7x16xf32> -> vector<7x16xf32>
    %86 = vector.broadcast %1 : vector<1x16xf32> to vector<7x16xf32>
    %87 = arith.addf %85, %86 : vector<7x16xf32>
    %cst_61 = arith.constant 0.000000e+00 : f32
    %88 = vector.broadcast %cst_61 : f32 to vector<7x16xf32>
    %89 = arith.maximumf %87, %88 : vector<7x16xf32>
    %90 = arith.truncf %89 : vector<7x16xf32> to vector<7x16xbf16>
    %c0_62 = arith.constant 0 : index
    %c3_63 = arith.constant 3 : index
    %c0_64 = arith.constant 0 : index
    %c0_65 = arith.constant 0 : index
    %91 = vector.load %arg4[%c0_62, %c3_63, %c0_64, %c0_65] : memref<1x7x7x16xbf16, #tpu.memory_space<vmem>>, vector<1x1x7x16xbf16>
    %92 = vector.shape_cast %91 : vector<1x1x7x16xbf16> to vector<7x16xbf16>
    %93 = vector.shape_cast %90 : vector<7x16xbf16> to vector<1x1x7x16xbf16>
    tpu.vector_store %arg4[%c0_62, %c3_63, %c0_64, %c0_65], %93 {strides = array<i32>} : memref<1x7x7x16xbf16, #tpu.memory_space<vmem>>, vector<1x1x7x16xbf16>,
    %c0_66 = arith.constant 0 : index
    %c8_67 = arith.constant 8 : index
    %c0_68 = arith.constant 0 : index
    %c0_69 = arith.constant 0 : index
    %94 = vector.load %arg1[%c0_66, %c8_67, %c0_68, %c0_69] : memref<1x16x8x8xf32, #tpu.memory_space<vmem>>, vector<1x1x8x8xf32>
    %95 = vector.shape_cast %94 : vector<1x1x8x8xf32> to vector<8x8xf32>
    %96 = vector.extract_strided_slice %95 {offsets = [0, 0], sizes = [7, 8], strides = [1, 1]} : vector<8x8xf32> to vector<7x8xf32>
    %97 = vector.extract_strided_slice %95 {offsets = [1, 0], sizes = [7, 4], strides = [1, 1]} : vector<8x8xf32> to vector<7x4xf32>
    %c0_70 = arith.constant 0 : index
    %c9 = arith.constant 9 : index
    %c0_71 = arith.constant 0 : index
    %c0_72 = arith.constant 0 : index
    %98 = vector.load %arg1[%c0_70, %c9, %c0_71, %c0_72] : memref<1x16x8x8xf32, #tpu.memory_space<vmem>>, vector<1x1x8x8xf32>
    %99 = vector.shape_cast %98 : vector<1x1x8x8xf32> to vector<8x8xf32>
    %100 = vector.extract_strided_slice %99 {offsets = [0, 0], sizes = [7, 8], strides = [1, 1]} : vector<8x8xf32> to vector<7x8xf32>
    %101 = vector.extract_strided_slice %99 {offsets = [1, 0], sizes = [7, 4], strides = [1, 1]} : vector<8x8xf32> to vector<7x4xf32>
    %c0_73 = arith.constant 0 : index
    %c10 = arith.constant 10 : index
    %c0_74 = arith.constant 0 : index
    %c0_75 = arith.constant 0 : index
    %102 = vector.load %arg1[%c0_73, %c10, %c0_74, %c0_75] : memref<1x16x8x8xf32, #tpu.memory_space<vmem>>, vector<1x1x8x8xf32>
    %103 = vector.shape_cast %102 : vector<1x1x8x8xf32> to vector<8x8xf32>
    %104 = vector.extract_strided_slice %103 {offsets = [0, 0], sizes = [7, 8], strides = [1, 1]} : vector<8x8xf32> to vector<7x8xf32>
    %105 = vector.extract_strided_slice %103 {offsets = [1, 0], sizes = [7, 4], strides = [1, 1]} : vector<8x8xf32> to vector<7x4xf32>
    %106 = tpu.concatenate %96, %97, %100, %101, %104, %105 in 1 : vector<7x8xf32>, vector<7x4xf32>, vector<7x8xf32>, vector<7x4xf32>, vector<7x8xf32>, vector<7x4xf32> -> vector<7x36xf32>
    %107 = arith.truncf %106 : vector<7x36xf32> to vector<7x36xbf16>
    %cst_76 = arith.constant dense<0.000000e+00> : vector<7x16xf32>
    %108 = tpu.matmul %107, %0, %cst_76 {dimension_numbers = #tpu.dot_dimension_numbers<[1], [0], [0], [1], [0, 0, 1, 1], [], []>} : vector<7x36xbf16>, vector<36x16xbf16>, vector<7x16xf32> -> vector<7x16xf32>
    %109 = vector.broadcast %1 : vector<1x16xf32> to vector<7x16xf32>
    %110 = arith.addf %108, %109 : vector<7x16xf32>
    %cst_77 = arith.constant 0.000000e+00 : f32
    %111 = vector.broadcast %cst_77 : f32 to vector<7x16xf32>
    %112 = arith.maximumf %110, %111 : vector<7x16xf32>
    %113 = arith.truncf %112 : vector<7x16xf32> to vector<7x16xbf16>
    %c0_78 = arith.constant 0 : index
    %c4_79 = arith.constant 4 : index
    %c0_80 = arith.constant 0 : index
    %c0_81 = arith.constant 0 : index
    %114 = vector.load %arg4[%c0_78, %c4_79, %c0_80, %c0_81] : memref<1x7x7x16xbf16, #tpu.memory_space<vmem>>, vector<1x1x7x16xbf16>
    %115 = vector.shape_cast %114 : vector<1x1x7x16xbf16> to vector<7x16xbf16>
    %116 = vector.shape_cast %113 : vector<7x16xbf16> to vector<1x1x7x16xbf16>
    tpu.vector_store %arg4[%c0_78, %c4_79, %c0_80, %c0_81], %116 {strides = array<i32>} : memref<1x7x7x16xbf16, #tpu.memory_space<vmem>>, vector<1x1x7x16xbf16>,
    %c0_82 = arith.constant 0 : index
    %c10_83 = arith.constant 10 : index
    %c0_84 = arith.constant 0 : index
    %c0_85 = arith.constant 0 : index
    %117 = vector.load %arg1[%c0_82, %c10_83, %c0_84, %c0_85] : memref<1x16x8x8xf32, #tpu.memory_space<vmem>>, vector<1x1x8x8xf32>
    %118 = vector.shape_cast %117 : vector<1x1x8x8xf32> to vector<8x8xf32>
    %119 = vector.extract_strided_slice %118 {offsets = [0, 0], sizes = [7, 8], strides = [1, 1]} : vector<8x8xf32> to vector<7x8xf32>
    %120 = vector.extract_strided_slice %118 {offsets = [1, 0], sizes = [7, 4], strides = [1, 1]} : vector<8x8xf32> to vector<7x4xf32>
    %c0_86 = arith.constant 0 : index
    %c11 = arith.constant 11 : index
    %c0_87 = arith.constant 0 : index
    %c0_88 = arith.constant 0 : index
    %121 = vector.load %arg1[%c0_86, %c11, %c0_87, %c0_88] : memref<1x16x8x8xf32, #tpu.memory_space<vmem>>, vector<1x1x8x8xf32>
    %122 = vector.shape_cast %121 : vector<1x1x8x8xf32> to vector<8x8xf32>
    %123 = vector.extract_strided_slice %122 {offsets = [0, 0], sizes = [7, 8], strides = [1, 1]} : vector<8x8xf32> to vector<7x8xf32>
    %124 = vector.extract_strided_slice %122 {offsets = [1, 0], sizes = [7, 4], strides = [1, 1]} : vector<8x8xf32> to vector<7x4xf32>
    %c0_89 = arith.constant 0 : index
    %c12 = arith.constant 12 : index
    %c0_90 = arith.constant 0 : index
    %c0_91 = arith.constant 0 : index
    %125 = vector.load %arg1[%c0_89, %c12, %c0_90, %c0_91] : memref<1x16x8x8xf32, #tpu.memory_space<vmem>>, vector<1x1x8x8xf32>
    %126 = vector.shape_cast %125 : vector<1x1x8x8xf32> to vector<8x8xf32>
    %127 = vector.extract_strided_slice %126 {offsets = [0, 0], sizes = [7, 8], strides = [1, 1]} : vector<8x8xf32> to vector<7x8xf32>
    %128 = vector.extract_strided_slice %126 {offsets = [1, 0], sizes = [7, 4], strides = [1, 1]} : vector<8x8xf32> to vector<7x4xf32>
    %129 = tpu.concatenate %119, %120, %123, %124, %127, %128 in 1 : vector<7x8xf32>, vector<7x4xf32>, vector<7x8xf32>, vector<7x4xf32>, vector<7x8xf32>, vector<7x4xf32> -> vector<7x36xf32>
    %130 = arith.truncf %129 : vector<7x36xf32> to vector<7x36xbf16>
    %cst_92 = arith.constant dense<0.000000e+00> : vector<7x16xf32>
    %131 = tpu.matmul %130, %0, %cst_92 {dimension_numbers = #tpu.dot_dimension_numbers<[1], [0], [0], [1], [0, 0, 1, 1], [], []>} : vector<7x36xbf16>, vector<36x16xbf16>, vector<7x16xf32> -> vector<7x16xf32>
    %132 = vector.broadcast %1 : vector<1x16xf32> to vector<7x16xf32>
    %133 = arith.addf %131, %132 : vector<7x16xf32>
    %cst_93 = arith.constant 0.000000e+00 : f32
    %134 = vector.broadcast %cst_93 : f32 to vector<7x16xf32>
    %135 = arith.maximumf %133, %134 : vector<7x16xf32>
    %136 = arith.truncf %135 : vector<7x16xf32> to vector<7x16xbf16>
    %c0_94 = arith.constant 0 : index
    %c5_95 = arith.constant 5 : index
    %c0_96 = arith.constant 0 : index
    %c0_97 = arith.constant 0 : index
    %137 = vector.load %arg4[%c0_94, %c5_95, %c0_96, %c0_97] : memref<1x7x7x16xbf16, #tpu.memory_space<vmem>>, vector<1x1x7x16xbf16>
    %138 = vector.shape_cast %137 : vector<1x1x7x16xbf16> to vector<7x16xbf16>
    %139 = vector.shape_cast %136 : vector<7x16xbf16> to vector<1x1x7x16xbf16>
    tpu.vector_store %arg4[%c0_94, %c5_95, %c0_96, %c0_97], %139 {strides = array<i32>} : memref<1x7x7x16xbf16, #tpu.memory_space<vmem>>, vector<1x1x7x16xbf16>,
    %c0_98 = arith.constant 0 : index
    %c12_99 = arith.constant 12 : index
    %c0_100 = arith.constant 0 : index
    %c0_101 = arith.constant 0 : index
    %140 = vector.load %arg1[%c0_98, %c12_99, %c0_100, %c0_101] : memref<1x16x8x8xf32, #tpu.memory_space<vmem>>, vector<1x1x8x8xf32>
    %141 = vector.shape_cast %140 : vector<1x1x8x8xf32> to vector<8x8xf32>
    %142 = vector.extract_strided_slice %141 {offsets = [0, 0], sizes = [7, 8], strides = [1, 1]} : vector<8x8xf32> to vector<7x8xf32>
    %143 = vector.extract_strided_slice %141 {offsets = [1, 0], sizes = [7, 4], strides = [1, 1]} : vector<8x8xf32> to vector<7x4xf32>
    %c0_102 = arith.constant 0 : index
    %c13 = arith.constant 13 : index
    %c0_103 = arith.constant 0 : index
    %c0_104 = arith.constant 0 : index
    %144 = vector.load %arg1[%c0_102, %c13, %c0_103, %c0_104] : memref<1x16x8x8xf32, #tpu.memory_space<vmem>>, vector<1x1x8x8xf32>
    %145 = vector.shape_cast %144 : vector<1x1x8x8xf32> to vector<8x8xf32>
    %146 = vector.extract_strided_slice %145 {offsets = [0, 0], sizes = [7, 8], strides = [1, 1]} : vector<8x8xf32> to vector<7x8xf32>
    %147 = vector.extract_strided_slice %145 {offsets = [1, 0], sizes = [7, 4], strides = [1, 1]} : vector<8x8xf32> to vector<7x4xf32>
    %c0_105 = arith.constant 0 : index
    %c14 = arith.constant 14 : index
    %c0_106 = arith.constant 0 : index
    %c0_107 = arith.constant 0 : index
    %148 = vector.load %arg1[%c0_105, %c14, %c0_106, %c0_107] : memref<1x16x8x8xf32, #tpu.memory_space<vmem>>, vector<1x1x8x8xf32>
    %149 = vector.shape_cast %148 : vector<1x1x8x8xf32> to vector<8x8xf32>
    %150 = vector.extract_strided_slice %149 {offsets = [0, 0], sizes = [7, 8], strides = [1, 1]} : vector<8x8xf32> to vector<7x8xf32>
    %151 = vector.extract_strided_slice %149 {offsets = [1, 0], sizes = [7, 4], strides = [1, 1]} : vector<8x8xf32> to vector<7x4xf32>
    %152 = tpu.concatenate %142, %143, %146, %147, %150, %151 in 1 : vector<7x8xf32>, vector<7x4xf32>, vector<7x8xf32>, vector<7x4xf32>, vector<7x8xf32>, vector<7x4xf32> -> vector<7x36xf32>
    %153 = arith.truncf %152 : vector<7x36xf32> to vector<7x36xbf16>
    %cst_108 = arith.constant dense<0.000000e+00> : vector<7x16xf32>
    %154 = tpu.matmul %153, %0, %cst_108 {dimension_numbers = #tpu.dot_dimension_numbers<[1], [0], [0], [1], [0, 0, 1, 1], [], []>} : vector<7x36xbf16>, vector<36x16xbf16>, vector<7x16xf32> -> vector<7x16xf32>
    %155 = vector.broadcast %1 : vector<1x16xf32> to vector<7x16xf32>
    %156 = arith.addf %154, %155 : vector<7x16xf32>
    %cst_109 = arith.constant 0.000000e+00 : f32
    %157 = vector.broadcast %cst_109 : f32 to vector<7x16xf32>
    %158 = arith.maximumf %156, %157 : vector<7x16xf32>
    %159 = arith.truncf %158 : vector<7x16xf32> to vector<7x16xbf16>
    %c0_110 = arith.constant 0 : index
    %c6_111 = arith.constant 6 : index
    %c0_112 = arith.constant 0 : index
    %c0_113 = arith.constant 0 : index
    %160 = vector.load %arg4[%c0_110, %c6_111, %c0_112, %c0_113] : memref<1x7x7x16xbf16, #tpu.memory_space<vmem>>, vector<1x1x7x16xbf16>
    %161 = vector.shape_cast %160 : vector<1x1x7x16xbf16> to vector<7x16xbf16>
    %162 = vector.shape_cast %159 : vector<7x16xbf16> to vector<1x1x7x16xbf16>
    tpu.vector_store %arg4[%c0_110, %c6_111, %c0_112, %c0_113], %162 {strides = array<i32>} : memref<1x7x7x16xbf16, #tpu.memory_space<vmem>>, vector<1x1x7x16xbf16>,
    return
  }
  func.func @transform_0(%arg0: i32) -> (i32, i32, i32, i32) {
    %c0_i32 = arith.constant 0 : i32
    %c0_i32_0 = arith.constant 0 : i32
    %c0_i32_1 = arith.constant 0 : i32
    %c0_i32_2 = arith.constant 0 : i32
    return %arg0, %c0_i32, %c0_i32_0, %c0_i32_1 : i32, i32, i32, i32
  }
  func.func @transform_1(%arg0: i32) -> (i32, i32) {
    %c0_i32 = arith.constant 0 : i32
    %c0_i32_0 = arith.constant 0 : i32
    %c0_i32_1 = arith.constant 0 : i32
    return %c0_i32, %c0_i32_0 : i32, i32
  }
  func.func @transform_2(%arg0: i32) -> (i32, i32) {
    %c0_i32 = arith.constant 0 : i32
    %c0_i32_0 = arith.constant 0 : i32
    %c0_i32_1 = arith.constant 0 : i32
    return %c0_i32, %c0_i32_0 : i32, i32
  }
  func.func @transform_3(%arg0: i32) -> (i32, i32, i32, i32) {
    %c0_i32 = arith.constant 0 : i32
    %c0_i32_0 = arith.constant 0 : i32
    %c0_i32_1 = arith.constant 0 : i32
    %c0_i32_2 = arith.constant 0 : i32
    return %arg0, %c0_i32, %c0_i32_0, %c0_i32_1 : i32, i32, i32, i32
  }
}

module attributes {stable_mosaic.version = 11 : i64} {
  func.func @_conv3x3_bn_relu_kernel(%arg0: i32, %arg1: memref<1x7x7x16xbf16, #tpu.memory_space<vmem>>, %arg2: memref<144x32xbf16, #tpu.memory_space<vmem>>, %arg3: memref<1x32xf32, #tpu.memory_space<vmem>>, %arg4: memref<1x5x5x32xf32, #tpu.memory_space<vmem>>) attributes {dimension_semantics = [#tpu.dimension_semantics<parallel>], iteration_bounds = array<i64: 2>, scalar_prefetch = 0 : i64, scratch_operands = 0 : i64, tpu.core_type = #tpu.core_type<tc>, window_params = [{transform_indices = @transform_0, window_bounds = array<i64: 1, 7, 7, 16>}, {pipeline_mode = #tpu.pipeline_mode<synchronous>, transform_indices = @transform_1, window_bounds = array<i64: 144, 32>}, {pipeline_mode = #tpu.pipeline_mode<synchronous>, transform_indices = @transform_2, window_bounds = array<i64: 1, 32>}, {transform_indices = @transform_3, window_bounds = array<i64: 1, 5, 5, 32>}]} {
    %c0 = arith.constant 0 : index
    %c0_0 = arith.constant 0 : index
    %0 = vector.load %arg2[%c0, %c0_0] : memref<144x32xbf16, #tpu.memory_space<vmem>>, vector<144x32xbf16>
    %c0_1 = arith.constant 0 : index
    %c0_2 = arith.constant 0 : index
    %1 = vector.load %arg3[%c0_1, %c0_2] : memref<1x32xf32, #tpu.memory_space<vmem>>, vector<1x32xf32>
    %c0_3 = arith.constant 0 : index
    %c0_4 = arith.constant 0 : index
    %c0_5 = arith.constant 0 : index
    %c0_6 = arith.constant 0 : index
    %2 = vector.load %arg1[%c0_3, %c0_4, %c0_5, %c0_6] : memref<1x7x7x16xbf16, #tpu.memory_space<vmem>>, vector<1x1x7x16xbf16>
    %3 = vector.shape_cast %2 : vector<1x1x7x16xbf16> to vector<7x16xbf16>
    %4 = vector.extract_strided_slice %3 {offsets = [0, 0], sizes = [5, 16], strides = [1, 1]} : vector<7x16xbf16> to vector<5x16xbf16>
    %5 = vector.extract_strided_slice %3 {offsets = [1, 0], sizes = [5, 16], strides = [1, 1]} : vector<7x16xbf16> to vector<5x16xbf16>
    %6 = vector.extract_strided_slice %3 {offsets = [2, 0], sizes = [5, 16], strides = [1, 1]} : vector<7x16xbf16> to vector<5x16xbf16>
    %c0_7 = arith.constant 0 : index
    %c1 = arith.constant 1 : index
    %c0_8 = arith.constant 0 : index
    %c0_9 = arith.constant 0 : index
    %7 = vector.load %arg1[%c0_7, %c1, %c0_8, %c0_9] : memref<1x7x7x16xbf16, #tpu.memory_space<vmem>>, vector<1x1x7x16xbf16>
    %8 = vector.shape_cast %7 : vector<1x1x7x16xbf16> to vector<7x16xbf16>
    %9 = vector.extract_strided_slice %8 {offsets = [0, 0], sizes = [5, 16], strides = [1, 1]} : vector<7x16xbf16> to vector<5x16xbf16>
    %10 = vector.extract_strided_slice %8 {offsets = [1, 0], sizes = [5, 16], strides = [1, 1]} : vector<7x16xbf16> to vector<5x16xbf16>
    %11 = vector.extract_strided_slice %8 {offsets = [2, 0], sizes = [5, 16], strides = [1, 1]} : vector<7x16xbf16> to vector<5x16xbf16>
    %c0_10 = arith.constant 0 : index
    %c2 = arith.constant 2 : index
    %c0_11 = arith.constant 0 : index
    %c0_12 = arith.constant 0 : index
    %12 = vector.load %arg1[%c0_10, %c2, %c0_11, %c0_12] : memref<1x7x7x16xbf16, #tpu.memory_space<vmem>>, vector<1x1x7x16xbf16>
    %13 = vector.shape_cast %12 : vector<1x1x7x16xbf16> to vector<7x16xbf16>
    %14 = vector.extract_strided_slice %13 {offsets = [0, 0], sizes = [5, 16], strides = [1, 1]} : vector<7x16xbf16> to vector<5x16xbf16>
    %15 = vector.extract_strided_slice %13 {offsets = [1, 0], sizes = [5, 16], strides = [1, 1]} : vector<7x16xbf16> to vector<5x16xbf16>
    %16 = vector.extract_strided_slice %13 {offsets = [2, 0], sizes = [5, 16], strides = [1, 1]} : vector<7x16xbf16> to vector<5x16xbf16>
    %17 = tpu.concatenate %4, %5, %6, %9, %10, %11, %14, %15, %16 in 1 : vector<5x16xbf16>, vector<5x16xbf16>, vector<5x16xbf16>, vector<5x16xbf16>, vector<5x16xbf16>, vector<5x16xbf16>, vector<5x16xbf16>, vector<5x16xbf16>, vector<5x16xbf16> -> vector<5x144xbf16>
    %cst = arith.constant dense<0.000000e+00> : vector<5x32xf32>
    %18 = tpu.matmul %17, %0, %cst {dimension_numbers = #tpu.dot_dimension_numbers<[1], [0], [0], [1], [0, 0, 1, 1], [], []>} : vector<5x144xbf16>, vector<144x32xbf16>, vector<5x32xf32> -> vector<5x32xf32>
    %19 = vector.broadcast %1 : vector<1x32xf32> to vector<5x32xf32>
    %20 = arith.addf %18, %19 : vector<5x32xf32>
    %cst_13 = arith.constant 0.000000e+00 : f32
    %21 = vector.broadcast %cst_13 : f32 to vector<5x32xf32>
    %22 = arith.maximumf %20, %21 : vector<5x32xf32>
    %c0_14 = arith.constant 0 : index
    %c0_15 = arith.constant 0 : index
    %c0_16 = arith.constant 0 : index
    %c0_17 = arith.constant 0 : index
    %23 = vector.load %arg4[%c0_14, %c0_15, %c0_16, %c0_17] : memref<1x5x5x32xf32, #tpu.memory_space<vmem>>, vector<1x1x5x32xf32>
    %24 = vector.shape_cast %23 : vector<1x1x5x32xf32> to vector<5x32xf32>
    %25 = vector.shape_cast %22 : vector<5x32xf32> to vector<1x1x5x32xf32>
    tpu.vector_store %arg4[%c0_14, %c0_15, %c0_16, %c0_17], %25 {strides = array<i32>} : memref<1x5x5x32xf32, #tpu.memory_space<vmem>>, vector<1x1x5x32xf32>,
    %c0_18 = arith.constant 0 : index
    %c1_19 = arith.constant 1 : index
    %c0_20 = arith.constant 0 : index
    %c0_21 = arith.constant 0 : index
    %26 = vector.load %arg1[%c0_18, %c1_19, %c0_20, %c0_21] : memref<1x7x7x16xbf16, #tpu.memory_space<vmem>>, vector<1x1x7x16xbf16>
    %27 = vector.shape_cast %26 : vector<1x1x7x16xbf16> to vector<7x16xbf16>
    %28 = vector.extract_strided_slice %27 {offsets = [0, 0], sizes = [5, 16], strides = [1, 1]} : vector<7x16xbf16> to vector<5x16xbf16>
    %29 = vector.extract_strided_slice %27 {offsets = [1, 0], sizes = [5, 16], strides = [1, 1]} : vector<7x16xbf16> to vector<5x16xbf16>
    %30 = vector.extract_strided_slice %27 {offsets = [2, 0], sizes = [5, 16], strides = [1, 1]} : vector<7x16xbf16> to vector<5x16xbf16>
    %c0_22 = arith.constant 0 : index
    %c2_23 = arith.constant 2 : index
    %c0_24 = arith.constant 0 : index
    %c0_25 = arith.constant 0 : index
    %31 = vector.load %arg1[%c0_22, %c2_23, %c0_24, %c0_25] : memref<1x7x7x16xbf16, #tpu.memory_space<vmem>>, vector<1x1x7x16xbf16>
    %32 = vector.shape_cast %31 : vector<1x1x7x16xbf16> to vector<7x16xbf16>
    %33 = vector.extract_strided_slice %32 {offsets = [0, 0], sizes = [5, 16], strides = [1, 1]} : vector<7x16xbf16> to vector<5x16xbf16>
    %34 = vector.extract_strided_slice %32 {offsets = [1, 0], sizes = [5, 16], strides = [1, 1]} : vector<7x16xbf16> to vector<5x16xbf16>
    %35 = vector.extract_strided_slice %32 {offsets = [2, 0], sizes = [5, 16], strides = [1, 1]} : vector<7x16xbf16> to vector<5x16xbf16>
    %c0_26 = arith.constant 0 : index
    %c3 = arith.constant 3 : index
    %c0_27 = arith.constant 0 : index
    %c0_28 = arith.constant 0 : index
    %36 = vector.load %arg1[%c0_26, %c3, %c0_27, %c0_28] : memref<1x7x7x16xbf16, #tpu.memory_space<vmem>>, vector<1x1x7x16xbf16>
    %37 = vector.shape_cast %36 : vector<1x1x7x16xbf16> to vector<7x16xbf16>
    %38 = vector.extract_strided_slice %37 {offsets = [0, 0], sizes = [5, 16], strides = [1, 1]} : vector<7x16xbf16> to vector<5x16xbf16>
    %39 = vector.extract_strided_slice %37 {offsets = [1, 0], sizes = [5, 16], strides = [1, 1]} : vector<7x16xbf16> to vector<5x16xbf16>
    %40 = vector.extract_strided_slice %37 {offsets = [2, 0], sizes = [5, 16], strides = [1, 1]} : vector<7x16xbf16> to vector<5x16xbf16>
    %41 = tpu.concatenate %28, %29, %30, %33, %34, %35, %38, %39, %40 in 1 : vector<5x16xbf16>, vector<5x16xbf16>, vector<5x16xbf16>, vector<5x16xbf16>, vector<5x16xbf16>, vector<5x16xbf16>, vector<5x16xbf16>, vector<5x16xbf16>, vector<5x16xbf16> -> vector<5x144xbf16>
    %cst_29 = arith.constant dense<0.000000e+00> : vector<5x32xf32>
    %42 = tpu.matmul %41, %0, %cst_29 {dimension_numbers = #tpu.dot_dimension_numbers<[1], [0], [0], [1], [0, 0, 1, 1], [], []>} : vector<5x144xbf16>, vector<144x32xbf16>, vector<5x32xf32> -> vector<5x32xf32>
    %43 = vector.broadcast %1 : vector<1x32xf32> to vector<5x32xf32>
    %44 = arith.addf %42, %43 : vector<5x32xf32>
    %cst_30 = arith.constant 0.000000e+00 : f32
    %45 = vector.broadcast %cst_30 : f32 to vector<5x32xf32>
    %46 = arith.maximumf %44, %45 : vector<5x32xf32>
    %c0_31 = arith.constant 0 : index
    %c1_32 = arith.constant 1 : index
    %c0_33 = arith.constant 0 : index
    %c0_34 = arith.constant 0 : index
    %47 = vector.load %arg4[%c0_31, %c1_32, %c0_33, %c0_34] : memref<1x5x5x32xf32, #tpu.memory_space<vmem>>, vector<1x1x5x32xf32>
    %48 = vector.shape_cast %47 : vector<1x1x5x32xf32> to vector<5x32xf32>
    %49 = vector.shape_cast %46 : vector<5x32xf32> to vector<1x1x5x32xf32>
    tpu.vector_store %arg4[%c0_31, %c1_32, %c0_33, %c0_34], %49 {strides = array<i32>} : memref<1x5x5x32xf32, #tpu.memory_space<vmem>>, vector<1x1x5x32xf32>,
    %c0_35 = arith.constant 0 : index
    %c2_36 = arith.constant 2 : index
    %c0_37 = arith.constant 0 : index
    %c0_38 = arith.constant 0 : index
    %50 = vector.load %arg1[%c0_35, %c2_36, %c0_37, %c0_38] : memref<1x7x7x16xbf16, #tpu.memory_space<vmem>>, vector<1x1x7x16xbf16>
    %51 = vector.shape_cast %50 : vector<1x1x7x16xbf16> to vector<7x16xbf16>
    %52 = vector.extract_strided_slice %51 {offsets = [0, 0], sizes = [5, 16], strides = [1, 1]} : vector<7x16xbf16> to vector<5x16xbf16>
    %53 = vector.extract_strided_slice %51 {offsets = [1, 0], sizes = [5, 16], strides = [1, 1]} : vector<7x16xbf16> to vector<5x16xbf16>
    %54 = vector.extract_strided_slice %51 {offsets = [2, 0], sizes = [5, 16], strides = [1, 1]} : vector<7x16xbf16> to vector<5x16xbf16>
    %c0_39 = arith.constant 0 : index
    %c3_40 = arith.constant 3 : index
    %c0_41 = arith.constant 0 : index
    %c0_42 = arith.constant 0 : index
    %55 = vector.load %arg1[%c0_39, %c3_40, %c0_41, %c0_42] : memref<1x7x7x16xbf16, #tpu.memory_space<vmem>>, vector<1x1x7x16xbf16>
    %56 = vector.shape_cast %55 : vector<1x1x7x16xbf16> to vector<7x16xbf16>
    %57 = vector.extract_strided_slice %56 {offsets = [0, 0], sizes = [5, 16], strides = [1, 1]} : vector<7x16xbf16> to vector<5x16xbf16>
    %58 = vector.extract_strided_slice %56 {offsets = [1, 0], sizes = [5, 16], strides = [1, 1]} : vector<7x16xbf16> to vector<5x16xbf16>
    %59 = vector.extract_strided_slice %56 {offsets = [2, 0], sizes = [5, 16], strides = [1, 1]} : vector<7x16xbf16> to vector<5x16xbf16>
    %c0_43 = arith.constant 0 : index
    %c4 = arith.constant 4 : index
    %c0_44 = arith.constant 0 : index
    %c0_45 = arith.constant 0 : index
    %60 = vector.load %arg1[%c0_43, %c4, %c0_44, %c0_45] : memref<1x7x7x16xbf16, #tpu.memory_space<vmem>>, vector<1x1x7x16xbf16>
    %61 = vector.shape_cast %60 : vector<1x1x7x16xbf16> to vector<7x16xbf16>
    %62 = vector.extract_strided_slice %61 {offsets = [0, 0], sizes = [5, 16], strides = [1, 1]} : vector<7x16xbf16> to vector<5x16xbf16>
    %63 = vector.extract_strided_slice %61 {offsets = [1, 0], sizes = [5, 16], strides = [1, 1]} : vector<7x16xbf16> to vector<5x16xbf16>
    %64 = vector.extract_strided_slice %61 {offsets = [2, 0], sizes = [5, 16], strides = [1, 1]} : vector<7x16xbf16> to vector<5x16xbf16>
    %65 = tpu.concatenate %52, %53, %54, %57, %58, %59, %62, %63, %64 in 1 : vector<5x16xbf16>, vector<5x16xbf16>, vector<5x16xbf16>, vector<5x16xbf16>, vector<5x16xbf16>, vector<5x16xbf16>, vector<5x16xbf16>, vector<5x16xbf16>, vector<5x16xbf16> -> vector<5x144xbf16>
    %cst_46 = arith.constant dense<0.000000e+00> : vector<5x32xf32>
    %66 = tpu.matmul %65, %0, %cst_46 {dimension_numbers = #tpu.dot_dimension_numbers<[1], [0], [0], [1], [0, 0, 1, 1], [], []>} : vector<5x144xbf16>, vector<144x32xbf16>, vector<5x32xf32> -> vector<5x32xf32>
    %67 = vector.broadcast %1 : vector<1x32xf32> to vector<5x32xf32>
    %68 = arith.addf %66, %67 : vector<5x32xf32>
    %cst_47 = arith.constant 0.000000e+00 : f32
    %69 = vector.broadcast %cst_47 : f32 to vector<5x32xf32>
    %70 = arith.maximumf %68, %69 : vector<5x32xf32>
    %c0_48 = arith.constant 0 : index
    %c2_49 = arith.constant 2 : index
    %c0_50 = arith.constant 0 : index
    %c0_51 = arith.constant 0 : index
    %71 = vector.load %arg4[%c0_48, %c2_49, %c0_50, %c0_51] : memref<1x5x5x32xf32, #tpu.memory_space<vmem>>, vector<1x1x5x32xf32>
    %72 = vector.shape_cast %71 : vector<1x1x5x32xf32> to vector<5x32xf32>
    %73 = vector.shape_cast %70 : vector<5x32xf32> to vector<1x1x5x32xf32>
    tpu.vector_store %arg4[%c0_48, %c2_49, %c0_50, %c0_51], %73 {strides = array<i32>} : memref<1x5x5x32xf32, #tpu.memory_space<vmem>>, vector<1x1x5x32xf32>,
    %c0_52 = arith.constant 0 : index
    %c3_53 = arith.constant 3 : index
    %c0_54 = arith.constant 0 : index
    %c0_55 = arith.constant 0 : index
    %74 = vector.load %arg1[%c0_52, %c3_53, %c0_54, %c0_55] : memref<1x7x7x16xbf16, #tpu.memory_space<vmem>>, vector<1x1x7x16xbf16>
    %75 = vector.shape_cast %74 : vector<1x1x7x16xbf16> to vector<7x16xbf16>
    %76 = vector.extract_strided_slice %75 {offsets = [0, 0], sizes = [5, 16], strides = [1, 1]} : vector<7x16xbf16> to vector<5x16xbf16>
    %77 = vector.extract_strided_slice %75 {offsets = [1, 0], sizes = [5, 16], strides = [1, 1]} : vector<7x16xbf16> to vector<5x16xbf16>
    %78 = vector.extract_strided_slice %75 {offsets = [2, 0], sizes = [5, 16], strides = [1, 1]} : vector<7x16xbf16> to vector<5x16xbf16>
    %c0_56 = arith.constant 0 : index
    %c4_57 = arith.constant 4 : index
    %c0_58 = arith.constant 0 : index
    %c0_59 = arith.constant 0 : index
    %79 = vector.load %arg1[%c0_56, %c4_57, %c0_58, %c0_59] : memref<1x7x7x16xbf16, #tpu.memory_space<vmem>>, vector<1x1x7x16xbf16>
    %80 = vector.shape_cast %79 : vector<1x1x7x16xbf16> to vector<7x16xbf16>
    %81 = vector.extract_strided_slice %80 {offsets = [0, 0], sizes = [5, 16], strides = [1, 1]} : vector<7x16xbf16> to vector<5x16xbf16>
    %82 = vector.extract_strided_slice %80 {offsets = [1, 0], sizes = [5, 16], strides = [1, 1]} : vector<7x16xbf16> to vector<5x16xbf16>
    %83 = vector.extract_strided_slice %80 {offsets = [2, 0], sizes = [5, 16], strides = [1, 1]} : vector<7x16xbf16> to vector<5x16xbf16>
    %c0_60 = arith.constant 0 : index
    %c5 = arith.constant 5 : index
    %c0_61 = arith.constant 0 : index
    %c0_62 = arith.constant 0 : index
    %84 = vector.load %arg1[%c0_60, %c5, %c0_61, %c0_62] : memref<1x7x7x16xbf16, #tpu.memory_space<vmem>>, vector<1x1x7x16xbf16>
    %85 = vector.shape_cast %84 : vector<1x1x7x16xbf16> to vector<7x16xbf16>
    %86 = vector.extract_strided_slice %85 {offsets = [0, 0], sizes = [5, 16], strides = [1, 1]} : vector<7x16xbf16> to vector<5x16xbf16>
    %87 = vector.extract_strided_slice %85 {offsets = [1, 0], sizes = [5, 16], strides = [1, 1]} : vector<7x16xbf16> to vector<5x16xbf16>
    %88 = vector.extract_strided_slice %85 {offsets = [2, 0], sizes = [5, 16], strides = [1, 1]} : vector<7x16xbf16> to vector<5x16xbf16>
    %89 = tpu.concatenate %76, %77, %78, %81, %82, %83, %86, %87, %88 in 1 : vector<5x16xbf16>, vector<5x16xbf16>, vector<5x16xbf16>, vector<5x16xbf16>, vector<5x16xbf16>, vector<5x16xbf16>, vector<5x16xbf16>, vector<5x16xbf16>, vector<5x16xbf16> -> vector<5x144xbf16>
    %cst_63 = arith.constant dense<0.000000e+00> : vector<5x32xf32>
    %90 = tpu.matmul %89, %0, %cst_63 {dimension_numbers = #tpu.dot_dimension_numbers<[1], [0], [0], [1], [0, 0, 1, 1], [], []>} : vector<5x144xbf16>, vector<144x32xbf16>, vector<5x32xf32> -> vector<5x32xf32>
    %91 = vector.broadcast %1 : vector<1x32xf32> to vector<5x32xf32>
    %92 = arith.addf %90, %91 : vector<5x32xf32>
    %cst_64 = arith.constant 0.000000e+00 : f32
    %93 = vector.broadcast %cst_64 : f32 to vector<5x32xf32>
    %94 = arith.maximumf %92, %93 : vector<5x32xf32>
    %c0_65 = arith.constant 0 : index
    %c3_66 = arith.constant 3 : index
    %c0_67 = arith.constant 0 : index
    %c0_68 = arith.constant 0 : index
    %95 = vector.load %arg4[%c0_65, %c3_66, %c0_67, %c0_68] : memref<1x5x5x32xf32, #tpu.memory_space<vmem>>, vector<1x1x5x32xf32>
    %96 = vector.shape_cast %95 : vector<1x1x5x32xf32> to vector<5x32xf32>
    %97 = vector.shape_cast %94 : vector<5x32xf32> to vector<1x1x5x32xf32>
    tpu.vector_store %arg4[%c0_65, %c3_66, %c0_67, %c0_68], %97 {strides = array<i32>} : memref<1x5x5x32xf32, #tpu.memory_space<vmem>>, vector<1x1x5x32xf32>,
    %c0_69 = arith.constant 0 : index
    %c4_70 = arith.constant 4 : index
    %c0_71 = arith.constant 0 : index
    %c0_72 = arith.constant 0 : index
    %98 = vector.load %arg1[%c0_69, %c4_70, %c0_71, %c0_72] : memref<1x7x7x16xbf16, #tpu.memory_space<vmem>>, vector<1x1x7x16xbf16>
    %99 = vector.shape_cast %98 : vector<1x1x7x16xbf16> to vector<7x16xbf16>
    %100 = vector.extract_strided_slice %99 {offsets = [0, 0], sizes = [5, 16], strides = [1, 1]} : vector<7x16xbf16> to vector<5x16xbf16>
    %101 = vector.extract_strided_slice %99 {offsets = [1, 0], sizes = [5, 16], strides = [1, 1]} : vector<7x16xbf16> to vector<5x16xbf16>
    %102 = vector.extract_strided_slice %99 {offsets = [2, 0], sizes = [5, 16], strides = [1, 1]} : vector<7x16xbf16> to vector<5x16xbf16>
    %c0_73 = arith.constant 0 : index
    %c5_74 = arith.constant 5 : index
    %c0_75 = arith.constant 0 : index
    %c0_76 = arith.constant 0 : index
    %103 = vector.load %arg1[%c0_73, %c5_74, %c0_75, %c0_76] : memref<1x7x7x16xbf16, #tpu.memory_space<vmem>>, vector<1x1x7x16xbf16>
    %104 = vector.shape_cast %103 : vector<1x1x7x16xbf16> to vector<7x16xbf16>
    %105 = vector.extract_strided_slice %104 {offsets = [0, 0], sizes = [5, 16], strides = [1, 1]} : vector<7x16xbf16> to vector<5x16xbf16>
    %106 = vector.extract_strided_slice %104 {offsets = [1, 0], sizes = [5, 16], strides = [1, 1]} : vector<7x16xbf16> to vector<5x16xbf16>
    %107 = vector.extract_strided_slice %104 {offsets = [2, 0], sizes = [5, 16], strides = [1, 1]} : vector<7x16xbf16> to vector<5x16xbf16>
    %c0_77 = arith.constant 0 : index
    %c6 = arith.constant 6 : index
    %c0_78 = arith.constant 0 : index
    %c0_79 = arith.constant 0 : index
    %108 = vector.load %arg1[%c0_77, %c6, %c0_78, %c0_79] : memref<1x7x7x16xbf16, #tpu.memory_space<vmem>>, vector<1x1x7x16xbf16>
    %109 = vector.shape_cast %108 : vector<1x1x7x16xbf16> to vector<7x16xbf16>
    %110 = vector.extract_strided_slice %109 {offsets = [0, 0], sizes = [5, 16], strides = [1, 1]} : vector<7x16xbf16> to vector<5x16xbf16>
    %111 = vector.extract_strided_slice %109 {offsets = [1, 0], sizes = [5, 16], strides = [1, 1]} : vector<7x16xbf16> to vector<5x16xbf16>
    %112 = vector.extract_strided_slice %109 {offsets = [2, 0], sizes = [5, 16], strides = [1, 1]} : vector<7x16xbf16> to vector<5x16xbf16>
    %113 = tpu.concatenate %100, %101, %102, %105, %106, %107, %110, %111, %112 in 1 : vector<5x16xbf16>, vector<5x16xbf16>, vector<5x16xbf16>, vector<5x16xbf16>, vector<5x16xbf16>, vector<5x16xbf16>, vector<5x16xbf16>, vector<5x16xbf16>, vector<5x16xbf16> -> vector<5x144xbf16>
    %cst_80 = arith.constant dense<0.000000e+00> : vector<5x32xf32>
    %114 = tpu.matmul %113, %0, %cst_80 {dimension_numbers = #tpu.dot_dimension_numbers<[1], [0], [0], [1], [0, 0, 1, 1], [], []>} : vector<5x144xbf16>, vector<144x32xbf16>, vector<5x32xf32> -> vector<5x32xf32>
    %115 = vector.broadcast %1 : vector<1x32xf32> to vector<5x32xf32>
    %116 = arith.addf %114, %115 : vector<5x32xf32>
    %cst_81 = arith.constant 0.000000e+00 : f32
    %117 = vector.broadcast %cst_81 : f32 to vector<5x32xf32>
    %118 = arith.maximumf %116, %117 : vector<5x32xf32>
    %c0_82 = arith.constant 0 : index
    %c4_83 = arith.constant 4 : index
    %c0_84 = arith.constant 0 : index
    %c0_85 = arith.constant 0 : index
    %119 = vector.load %arg4[%c0_82, %c4_83, %c0_84, %c0_85] : memref<1x5x5x32xf32, #tpu.memory_space<vmem>>, vector<1x1x5x32xf32>
    %120 = vector.shape_cast %119 : vector<1x1x5x32xf32> to vector<5x32xf32>
    %121 = vector.shape_cast %118 : vector<5x32xf32> to vector<1x1x5x32xf32>
    tpu.vector_store %arg4[%c0_82, %c4_83, %c0_84, %c0_85], %121 {strides = array<i32>} : memref<1x5x5x32xf32, #tpu.memory_space<vmem>>, vector<1x1x5x32xf32>,
    return
  }
  func.func @transform_0(%arg0: i32) -> (i32, i32, i32, i32) {
    %c0_i32 = arith.constant 0 : i32
    %c0_i32_0 = arith.constant 0 : i32
    %c0_i32_1 = arith.constant 0 : i32
    %c0_i32_2 = arith.constant 0 : i32
    return %arg0, %c0_i32, %c0_i32_0, %c0_i32_1 : i32, i32, i32, i32
  }
  func.func @transform_1(%arg0: i32) -> (i32, i32) {
    %c0_i32 = arith.constant 0 : i32
    %c0_i32_0 = arith.constant 0 : i32
    %c0_i32_1 = arith.constant 0 : i32
    return %c0_i32, %c0_i32_0 : i32, i32
  }
  func.func @transform_2(%arg0: i32) -> (i32, i32) {
    %c0_i32 = arith.constant 0 : i32
    %c0_i32_0 = arith.constant 0 : i32
    %c0_i32_1 = arith.constant 0 : i32
    return %c0_i32, %c0_i32_0 : i32, i32
  }
  func.func @transform_3(%arg0: i32) -> (i32, i32, i32, i32) {
    %c0_i32 = arith.constant 0 : i32
    %c0_i32_0 = arith.constant 0 : i32
    %c0_i32_1 = arith.constant 0 : i32
    %c0_i32_2 = arith.constant 0 : i32
    return %arg0, %c0_i32, %c0_i32_0, %c0_i32_1 : i32, i32, i32, i32
  }
}

</mosaic_0001>

<bundles_post_ra>
// kernel: double_conv_block_forward.2
= control target key start
LH: loop header
LB: loop body
LE: loop exit
PB: predicated region body
PF: predicated region fallthrough
CT: control target
= control target key end

     0   :  { %s1114_s12 = smov 0   ;;  %s1365_s0 = inlined_call_operand.vmem [shape: f32[2,16,8,8], index: 0, kind: input, shape index: {}]   ;;  %s1366_s1 = inlined_call_operand.vmem [shape: bf16[36,16], index: 1, kind: input, shape index: {}]   ;;  %s1367_s2 = inlined_call_operand.vmem [shape: f32[1,16], index: 2, kind: input, shape index: {}]   ;;  %s1368_s3 = inlined_call_operand.vmem [shape: bf16[2,7,7,16], index: 3, kind: output, shape index: {}]  }
   0x1 LB: > { %s833_s13 = sadd.s32 4294967295, %s1085_s12   ;;  %p837_p0 = scmp.ge.s32.totalorder %s1085_s12, 1  ;;  %s1085_s12 = sphi %s1114_s12, %s13_s12  }
   0x2   : > { %p137_p1 = scmp.lt.s32.totalorder %s1085_s12, 3 }
   0x4   : > { %p138_p2 = pnand %p837_p0, %p137_p1 }
   0x5   : > { %p161_p3 = scmp.lt.s32.totalorder (!%p138_p2), %s833_s13, 1  ;;  %v1125_v0 = vld [vmem:[%s1366_s1] sm:$0xff] (!%p138_p2)   ;;  %v1087_v1 = vmov (!%p138_p2), 0.0   ;;  %v1136_v2 = vld [vmem:[%s1366_s1 + $0x8] sm:$0xff] (!%p138_p2)   ;;  %vm240_vm0 = vcmask (!%p138_p2), 1041408   ;;  %s1088_s24 = smov (!%p138_p2), 12  }
   0x6   : > { %141 = sbr.rel (%p138_p2) target bundleno = 403 (0x193), region = 32  ;;  %915 = vmatprep.subr.bf16.mxu0 (!%p138_p2), %v1087_v1  ;;  %925 = vmatprep.subr.bf16.mxu1 (!%p138_p2), %v1087_v1  ;;  %v1078_v3 = vld [vmem:[%s1366_s1 + $0x10] ss:$0 sps:$4 sm:$0x33] (!%p138_p2)   ;;  %s1089_s25 = smov (!%p138_p2), 20   ;;  %vm1092_vm1 = vmmov (!%p138_p2), 0  }
   0x7   : > { %916 = vmatpush3.bf16.msra.mxu0 (!%p138_p2), %v1125_v0  ;;  %926 = vmatpush3.bf16.msra.mxu1 (!%p138_p2), %v1125_v0  ;;  %v1156_v7 = vsel (!%p138_p2), %vm240_vm0, %v1078_v3, 0  ;;  %s1090_s26 = smov (!%p138_p2), 8   ;;  %s1091_s27 = smov (!%p138_p2), 24   ;;  %vm204_vm2 = vcmask (!%p138_p2), 64512   ;;  %vm206_vm3 = vcmask (!%p138_p2), 97280   ;;  %vm208_vm4 = vcmask (!%p138_p2), 162816  }
   0x8   : > { %917 = vmatprep.subr.bf16.mxu0 (!%p138_p2), %v1087_v1  ;;  %927 = vmatprep.subr.bf16.mxu1 (!%p138_p2), %v1087_v1  ;;  %s1093_s28 = smov (!%p138_p2), 32   ;;  %vm210_vm5 = vcmask (!%p138_p2), 195584   ;;  %vm212_vm6 = vcmask (!%p138_p2), 261120   ;;  %vm236_vm7 = vcmask (!%p138_p2), 293888   ;;  %vm286_vm8 = vcmask (!%p138_p2), 125952  }
   0x9   : > { %921 = vmatprep.mubr.msk.bf16.mxu0 (!%p138_p2), %vm1092_vm1, %v1087_v1  ;;  %931 = vmatprep.mubr.msk.bf16.mxu1 (!%p138_p2), %vm1092_vm1, %v1087_v1  ;;  %vm287_vm9 = vsmask.f32 (!%p138_p2), 3328 }
   0xa   : > { %vm1325_vm10 = vmand (!%p138_p2), %vm286_vm8, %vm287_vm9 }
   0xb   : > { %918 = vmatpush3.bf16.msra.mxu0 (!%p138_p2), %v1136_v2  ;;  %928 = vmatpush3.bf16.msra.mxu1 (!%p138_p2), %v1136_v2 }
   0xc   : > { %919 = vmatprep.subr.bf16.mxu0 (!%p138_p2), %v1087_v1  ;;  %929 = vmatprep.subr.bf16.mxu1 (!%p138_p2), %v1087_v1 }
   0xd   : > { %s1372_s13 = smov (!%p161_p3, %s833_s13), 1 }
   0xe   : > { %s886_s18 = sshll.u32 %s1372_s13, 7  ;;  %s985_s29 = smul.u32 28, %s1372_s13 }
   0xf   : > { %s1147_s23 = scalar_lea.vmem %s1365_s0, %s886_s18  ;;  %920 = vmatpush3.bf16.msra.mxu0 %v1156_v7  ;;  %930 = vmatpush3.bf16.msra.mxu1 %v1156_v7 }
  0x10   : > { %v841_v4 = vld [vmem:[%s1147_s23 + $0x8] sm:$0xff]  ;;  %v849_v5 = vld [vmem:[%s1147_s23 + $0x18] sm:$0xff]  ;;  %v1152_v6 = vld [vmem:[%s1147_s23] sm:$0xff]  ;;  %935 = vmatprep.subr.bf16.mxu0 %v1087_v1  ;;  %945 = vmatprep.subr.bf16.mxu1 %v1087_v1  ;;  %s1321_s7 = scalar_lea.vmem %s1368_s3, %s985_s29 }
  0x11   : > { %v1001_v8 = vpack.i.bf16 %v849_v5, %v841_v4  ;;  %v192_v9 = vrot.slane %v841_v4, 1  ;;  %v306_v10 = vrot.slane %v849_v5, 1  ;;  %v184_v11 = vrot.slane %v1152_v6, 1  ;;  %v1160_v12 = vld [vmem:[%s1147_s23 + $0x10] sm:$0xff]  ;;  %v1163_v13 = vld [vmem:[%s1147_s23 + $0x20] sm:$0xff]  ;;  %v855_v21 = vld [vmem:[%s1147_s23 + $0x28] sm:$0xff] }
  0x12   : > { %v298_v14 = vrot.slane %v1160_v12, 1  ;;  %v1169_v15 = vld [vmem:[%s1147_s23 + $0x30] sm:$0xff]  ;;  %v314_v17 = vrot.slane %v1163_v13, 1  ;;  %v1016_v19 = vpack.i.bf16 %v1163_v13, %v1160_v12  ;;  %v861_v22 = vld [vmem:[%s1147_s23 + $0x38] sm:$0xff]  ;;  %v387_v25 = vrot.slane %v855_v21, 1  ;;  %v1188_v27 = vld [vmem:[%s1147_s23 + $0x40] sm:$0xff] }
  0x13   : > { %1002 = vrot.lane.b32.xlu0 %v1001_v8, %s1088_s24  ;;  %v1011_v16 = vpack.i.bf16 %v306_v10, %v192_v9  ;;  %v460_v20 = vrot.slane %v1169_v15, 1  ;;  %v468_v26 = vrot.slane %v861_v22, 1  ;;  %v1026_v28 = vpack.i.bf16 %v861_v22, %v855_v21  ;;  %v1194_v29 = vld [vmem:[%s1147_s23 + $0x50] sm:$0xff]  ;;  %v867_v35 = vld [vmem:[%s1147_s23 + $0x48] sm:$0xff]  ;;  %v873_v36 = vld [vmem:[%s1147_s23 + $0x58] sm:$0xff] }
  0x14   : > { %v1006_v18 = vpack.i.bf16 %v298_v14, %v184_v11  ;;  %v1021_v23 = vpack.i.bf16 %v314_v17, %v298_v14  ;;  %v476_v31 = vrot.slane %v1188_v27, 1  ;;  %v1041_v32 = vpack.i.bf16 %v1188_v27, %v1169_v15  ;;  %v1210_v40 = vld [vmem:[%s1147_s23 + $0x60] sm:$0xff]  ;;  %v879_v41 = vld [vmem:[%s1147_s23 + $0x68] sm:$0xff]  ;;  %v880_v45 = vld [vmem:[%s1147_s23 + $0x70] sm:$0xff] }
  0x15   : > { %1012 = vrot.lane.b32.xlu1 %v1011_v16, %s1089_s25  ;;  %v1031_v24 = vpack.i.bf16 %v460_v20, %v314_v17  ;;  %v1036_v30 = vpack.i.bf16 %v468_v26, %v387_v25  ;;  %v622_v33 = vrot.slane %v1194_v29, 1  ;;  %v1056_v38 = vpack.i.bf16 %v873_v36, %v867_v35 }
  0x16   : > { %v1046_v34 = vpack.i.bf16 %v476_v31, %v460_v20  ;;  %v549_v39 = vrot.slane %v867_v35, 1  ;;  %v703_v42 = vrot.slane %v1210_v40, 1  ;;  %v711_v43 = vrot.slane %v879_v41, 1 }
  0x17   : > { %1007 = vrot.lane.b32.xlu0 %v1006_v18, %s1090_s26  ;;  %v1051_v37 = vpack.i.bf16 %v622_v33, %v476_v31  ;;  %v630_v44 = vrot.slane %v873_v36, 1  ;;  %v719_v47 = vrot.slane %v880_v45, 1  ;;  %v1066_v48 = vpack.i.bf16 %v880_v45, %v1210_v40 }
  0x19   : > { %1017 = vrot.lane.b32.xlu1 %v1016_v19, %s1091_s27  ;;  %v1061_v46 = vpack.i.bf16 %v711_v43, %v630_v44  ;;  %v1071_v49 = vpack.i.bf16 %v719_v47, %v703_v42 }
  0x1b   : > { %1022 = vrot.lane.b32.xlu0 %v1021_v23, %s1093_s28 }
  0x1d   : > { %1032 = vrot.lane.b32.xlu1 %v1031_v24, %s1090_s26 }
  0x1f   : > { %1027 = vrot.lane.b32.xlu0 %v1026_v28, %s1088_s24 }
  0x21   : > { %1037 = vrot.lane.b32.xlu1 %v1036_v30, %s1089_s25 }
  0x23   : > { %1042 = vrot.lane.b32.xlu0 %v1041_v32, %s1091_s27 }
  0x25   : > { %1047 = vrot.lane.b32.xlu1 %v1046_v34, %s1093_s28 }
  0x27   : > { %1052 = vrot.lane.b32.xlu0 %v1051_v37, %s1090_s26 }
  0x29   : > { %1057 = vrot.lane.b32.xlu1 %v1056_v38, %s1088_s24 }
  0x2b   : > { %550 = vrot.lane.b32.xlu0 %v549_v39, %s1089_s25 }
  0x2d   : > { %554 = vrot.lane.b32.xlu1 %v1194_v29, %s1091_s27 }
  0x2f   : > { %558 = vrot.lane.b32.xlu0 %v622_v33, %s1093_s28 }
  0x31   : > { %704 = vrot.lane.b32.xlu1 %v703_v42, %s1090_s26 }
  0x33   : > { %708 = vrot.lane.b32.xlu0 %v879_v41, %s1088_s24 }
  0x35   : > { %1062 = vrot.lane.b32.xlu1 %v1061_v46, %s1089_s25 }
  0x37   : > { %1067 = vrot.lane.b32.xlu0 %v1066_v48, %s1091_s27 }
  0x39   : > { %1072 = vrot.lane.b32.xlu1 %v1071_v49, %s1093_s28 }
  0x85   : > { %v1003_v50 = vpop.permute.xlu0 %1002 }
  0x86   : > { %v1005_v55 = vunpack.i.h.bf16 %v1003_v50  ;;  %v1004_v56 = vunpack.i.l.bf16 %v1003_v50 }
  0x87   : > { %v1013_v51 = vpop.permute.xlu1 %1012 }
  0x88   : > { %v1015_v57 = vunpack.i.h.bf16 %v1013_v51  ;;  %v1014_v58 = vunpack.i.l.bf16 %v1013_v51 }
  0x89   : > { %v1008_v52 = vpop.permute.xlu0 %1007 }
  0x8a   : > { %v1010_v53 = vunpack.i.h.bf16 %v1008_v52  ;;  %v1009_v54 = vunpack.i.l.bf16 %v1008_v52 }
  0x8b   : > { %v1018_v59 = vpop.permute.xlu1 %1017 }
  0x8c   : > { %v318_v60 = vsel %vm204_vm2, %v1160_v12, %v1010_v53  ;;  %v205_v61 = vsel %vm204_vm2, %v1152_v6, %v1009_v54  ;;  %v1020_v62 = vunpack.i.h.bf16 %v1018_v59  ;;  %v1019_v63 = vunpack.i.l.bf16 %v1018_v59 }
  0x8d   : > { %v319_v3 = vsel %vm206_vm3, %v318_v60, %v1005_v55  ;;  %v207_v4 = vsel %vm206_vm3, %v205_v61, %v1004_v56  ;;  %v1023_v5 = vpop.permute.xlu0 %1022 }
  0x8e   : > { %v209_v8 = vsel %vm208_vm4, %v207_v4, %v1014_v58  ;;  %v320_v9 = vsel %vm208_vm4, %v319_v3, %v1015_v57  ;;  %v1025_v10 = vunpack.i.h.bf16 %v1023_v5  ;;  %v1024_v11 = vunpack.i.l.bf16 %v1023_v5 }
  0x8f   : > { %v211_v14 = vsel %vm210_vm5, %v209_v8, %v1019_v63  ;;  %v321_v12 = vsel %vm210_vm5, %v320_v9, %v1020_v62  ;;  %v1033_v16 = vpop.permute.xlu1 %1032 }
  0x90   : > { %v213_v6 = vsel %vm212_vm6, %v211_v14, %v1024_v11  ;;  %v322_v17 = vsel %vm212_vm6, %v321_v12, %v1025_v10  ;;  %v1035_v18 = vunpack.i.h.bf16 %v1033_v16  ;;  %v1034_v19 = vunpack.i.l.bf16 %v1033_v16 }
  0x91   : > { %v214_v20 = vpack.c.bf16 %v213_v6, %v213_v6  ;;  %v323_v21 = vpack.c.bf16 %v322_v17, %v322_v17  ;;  %v1028_v22 = vpop.permute.xlu0 %1027 }
  0x92   : > { %v480_v23 = vsel %vm204_vm2, %v1169_v15, %v1035_v18  ;;  %v399_v24 = vsel %vm204_vm2, %v1163_v13, %v1034_v19  ;;  %v1030_v25 = vunpack.i.h.bf16 %v1028_v22  ;;  %v1029_v26 = vunpack.i.l.bf16 %v1028_v22 }
  0x93   : > { %v1038_v28 = vpop.permute.xlu1 %1037  ;;  %922 = vmatmul.mubr.msk.bf16.vlgmr.msra.gmra.mrb[0].mxu0 %vm236_vm7, %v214_v20  ;;  %932 = vmatmul.mubr.msk.bf16.vlgmr.msra.gmra.mrb[0].mxu1 %vm236_vm7, %v323_v21 }
  0x94   : > { %v481_v30 = vsel %vm206_vm3, %v480_v23, %v1030_v25  ;;  %v400_v31 = vsel %vm206_vm3, %v399_v24, %v1029_v26  ;;  %v1040_v32 = vunpack.i.h.bf16 %v1038_v28  ;;  %v1039_v33 = vunpack.i.l.bf16 %v1038_v28  ;;  %936 = vmatpush3.bf16.msra.mxu0 %v1125_v0  ;;  %946 = vmatpush3.bf16.msra.mxu1 %v1125_v0  ;;  %v1316_v23 = vld [vmem:[%s1367_s2] ss:$0 sm:$0xff] }
  0x95   : > { %v1043_v15 = vpop.permute.xlu0 %1042  ;;  %937 = vmatprep.subr.bf16.mxu0 %v1087_v1  ;;  %947 = vmatprep.subr.bf16.mxu1 %v1087_v1 }
  0x96   : > { %v401_v13 = vsel %vm208_vm4, %v400_v31, %v1039_v33  ;;  %v482_v34 = vsel %vm208_vm4, %v481_v30, %v1040_v32  ;;  %v1045_v35 = vunpack.i.h.bf16 %v1043_v15  ;;  %v1044_v36 = vunpack.i.l.bf16 %v1043_v15  ;;  %941 = vmatprep.mubr.msk.bf16.mxu0 %vm1092_vm1, %v1087_v1  ;;  %951 = vmatprep.mubr.msk.bf16.mxu1 %vm1092_vm1, %v1087_v1 }
  0x97   : > { %v1048_v37 = vpop.permute.xlu1 %1047 }
  0x98   : > { %v402_v38 = vsel %vm210_vm5, %v401_v13, %v1044_v36  ;;  %v483_v39 = vsel %vm210_vm5, %v482_v34, %v1045_v35  ;;  %v1050_v41 = vunpack.i.h.bf16 %v1048_v37  ;;  %v1049_v42 = vunpack.i.l.bf16 %v1048_v37  ;;  %938 = vmatpush3.bf16.msra.mxu0 %v1136_v2  ;;  %948 = vmatpush3.bf16.msra.mxu1 %v1136_v2  ;;  %v289_v34 = vld [vmem:[%s1321_s7] sm:$0xf]  ;;  %v852_v35 = vld [vmem:[%s1321_s7 + $0x4] sm:$0xf] }
  0x99   : > { %v1053_v43 = vpop.permute.xlu0 %1052  ;;  %939 = vmatprep.subr.bf16.mxu0 %v1087_v1  ;;  %949 = vmatprep.subr.bf16.mxu1 %v1087_v1 }
  0x9a   : > { %v403_v44 = vsel %vm212_vm6, %v402_v38, %v1049_v42  ;;  %v484_v45 = vsel %vm212_vm6, %v483_v39, %v1050_v41  ;;  %v1054_v46 = vunpack.i.l.bf16 %v1053_v43  ;;  %v1055_v57 = vunpack.i.h.bf16 %v1053_v43 }
  0x9b   : > { %v404_v47 = vpack.c.bf16 %v403_v44, %v403_v44  ;;  %v485_v48 = vpack.c.bf16 %v484_v45, %v484_v45  ;;  %v1058_v49 = vpop.permute.xlu1 %1057 }
  0x9c   : > { %v1059_v50 = vunpack.i.l.bf16 %v1058_v49  ;;  %940 = vmatpush3.bf16.msra.mxu0 %v1156_v7  ;;  %950 = vmatpush3.bf16.msra.mxu1 %v1156_v7  ;;  %v561_v51 = vsel %vm204_vm2, %v1188_v27, %v1054_v46  ;;  %v1060_v60 = vunpack.i.h.bf16 %v1058_v49  ;;  %v642_v62 = vsel %vm204_vm2, %v1194_v29, %v1055_v57 }
  0x9d   : > { %v551_v52 = vpop.permute.xlu0 %550  ;;  %955 = vmatprep.subr.bf16.mxu0 %v1087_v1  ;;  %965 = vmatprep.subr.bf16.mxu1 %v1087_v1 }
  0x9e   : > { %v562_v53 = vsel %vm206_vm3, %v561_v51, %v1059_v50  ;;  %v643_v9 = vsel %vm206_vm3, %v642_v62, %v1060_v60 }
  0x9f   : > { %v563_v54 = vsel %vm208_vm4, %v562_v53, %v551_v52  ;;  %942 = vmatmul.mubr.msk.bf16.vlgmr.msra.gmra.mrb[4].mxu0 %vm236_vm7, %v404_v47  ;;  %952 = vmatmul.mubr.msk.bf16.vlgmr.msra.gmra.mrb[4].mxu1 %vm236_vm7, %v485_v48  ;;  %v555_v55 = vpop.permute.xlu1 %554  ;;  %v858_v53 = vld [vmem:[%s1321_s7 + $0x8] sm:$0xf] }
  0xa0   : > { %956 = vmatpush3.bf16.msra.mxu0 %v1125_v0  ;;  %966 = vmatpush3.bf16.msra.mxu1 %v1125_v0  ;;  %v564_v27 = vsel %vm210_vm5, %v563_v54, %v555_v55  ;;  %v864_v54 = vld [vmem:[%s1321_s7 + $0xc] sm:$0xf] }
  0xa1   : > { %v559_v56 = vpop.permute.xlu0 %558  ;;  %957 = vmatprep.subr.bf16.mxu0 %v1087_v1  ;;  %961 = vmatprep.mubr.msk.bf16.mxu0 %vm1092_vm1, %v1087_v1 }
  0xa2   : > { %967 = vmatprep.subr.bf16.mxu1 %v1087_v1  ;;  %971 = vmatprep.mubr.msk.bf16.mxu1 %vm1092_vm1, %v1087_v1  ;;  %v565_v59 = vsel %vm212_vm6, %v564_v27, %v559_v56 }
  0xa3   : > { %v705_v58 = vpop.permute.xlu1 %704  ;;  %v566_v3 = vpack.c.bf16 %v565_v59, %v565_v59 }
  0xa4   : > { %958 = vmatpush3.bf16.msra.mxu0 %v1136_v2  ;;  %968 = vmatpush3.bf16.msra.mxu1 %v1136_v2  ;;  %v723_v63 = vsel %vm204_vm2, %v1210_v40, %v705_v58 }
  0xa5   : > { %v709_v61 = vpop.permute.xlu0 %708  ;;  %959 = vmatprep.subr.bf16.mxu0 %v1087_v1  ;;  %969 = vmatprep.subr.bf16.mxu1 %v1087_v1 }
  0xa6   : > { %v724_v10 = vsel %vm206_vm3, %v723_v63, %v709_v61 }
  0xa7   : > { %v1063_v4 = vpop.permute.xlu1 %1062 }
  0xa8   : > { %v1065_v5 = vunpack.i.h.bf16 %v1063_v4  ;;  %v1064_v8 = vunpack.i.l.bf16 %v1063_v4  ;;  %960 = vmatpush3.bf16.msra.mxu0 %v1156_v7  ;;  %970 = vmatpush3.bf16.msra.mxu1 %v1156_v7 }
  0xa9   : > { %v1068_v11 = vpop.permute.xlu0 %1067  ;;  %975 = vmatprep.subr.bf16.mxu0 %v1087_v1 }
  0xaa   : > { %v644_v29 = vsel %vm208_vm4, %v643_v9, %v1064_v8  ;;  %v1069_v14 = vunpack.i.l.bf16 %v1068_v11  ;;  %v1070_v12 = vunpack.i.h.bf16 %v1068_v11  ;;  %v725_v16 = vsel %vm208_vm4, %v724_v10, %v1065_v5 }
  0xab   : > { %962 = vmatmul.mubr.msk.bf16.vlgmr.msra.gmra.mrb[8].mxu0 %vm236_vm7, %v566_v3  ;;  %v1073_v40 = vpop.permute.xlu1 %1072  ;;  %v870_v3 = vld [vmem:[%s1321_s7 + $0x10] sm:$0xf] }
  0xac   : > { %v645_v6 = vsel %vm210_vm5, %v644_v29, %v1069_v14  ;;  %v1074_v17 = vunpack.i.l.bf16 %v1073_v40  ;;  %976 = vmatpush3.bf16.msra.mxu0 %v1125_v0  ;;  %981 = vmatprep.mubr.msk.bf16.mxu0 %vm1092_vm1, %v1087_v1  ;;  %v1075_v18 = vunpack.i.h.bf16 %v1073_v40  ;;  %v726_v20 = vsel %vm210_vm5, %v725_v16, %v1070_v12  ;;  %v876_v12 = vld [vmem:[%s1321_s7 + $0x14] sm:$0xf] }
  0xad   : > { %977 = vmatprep.subr.bf16.mxu0 %v1087_v1 }
  0xae   : > { %v646_v19 = vsel %vm212_vm6, %v645_v6, %v1074_v17  ;;  %v727_v22 = vsel %vm212_vm6, %v726_v20, %v1075_v18 }
  0xaf   : > { %v647_v21 = vpack.c.bf16 %v646_v19, %v646_v19  ;;  %v728_v0 = vpack.c.bf16 %v727_v22, %v727_v22  ;;  %v882_v22 = vld [vmem:[%s1321_s7 + $0x18] sm:$0xf] }
  0xb0   : > { %978 = vmatpush3.bf16.msra.mxu0 %v1136_v2 }
  0xb1   : > { %972 = vmatmul.mubr.msk.bf16.vlgmr.msra.gmra.mrb[8].mxu1 %vm236_vm7, %v647_v21  ;;  %979 = vmatprep.subr.bf16.mxu0 %v1087_v1 }
  0xb4   : > { %980 = vmatpush3.bf16.msra.mxu0 %v1156_v7 }
  0xb7   : > { %982 = vmatmul.mubr.msk.bf16.vlgmr.msra.gmra.mrb[12].mxu0 %vm236_vm7, %v728_v0 }
 0x166   : > { %v278_v24 = vpop.f32.mrb[0].mxu0  ;;  %v361_v25 = vpop.f32.mrb[0].mxu1 }
 0x167   : > { %v279_v1 = vadd.f32 %v1316_v23, %v278_v24  ;;  %v362_v2 = vadd.f32 %v1316_v23, %v361_v25  ;;  %v923_v7 = vpop.f32.mrb[1].mxu0  ;;  %v933_v26 = vpop.f32.mrb[1].mxu1 }
 0x168   : > { %v281_v28 = vpop.f32.mrb[2].mxu0  ;;  %v364_v30 = vpop.f32.mrb[2].mxu1 }
 0x169   : > { %v284_v31 = vmax.f32 %v279_v1, 0.0  ;;  %v367_v32 = vmax.f32 %v362_v2, 0.0  ;;  %v924_v33 = vpop.f32.mrb[3].mxu0  ;;  %v934_v15 = vpop.f32.mrb[3].mxu1 }
 0x16b   : > { %v285_v36 = vpack.c.bf16 %v284_v31, %v284_v31  ;;  %v368_v37 = vpack.c.bf16 %v367_v32, %v367_v32 }
 0x16d   : > { %v290_v38 = vsel %vm1325_vm10, %v285_v36, %v289_v34  ;;  %v371_v39 = vsel %vm1325_vm10, %v368_v37, %v852_v35 }
 0x16e   : > { %291 = vst [vmem:[%s1321_s7] sm:$0xf] %v290_v38  ;;  %853 = vst [vmem:[%s1321_s7 + $0x4] sm:$0xf] %v371_v39 }
 0x172   : > { %v442_v41 = vpop.f32.mrb[4].mxu0  ;;  %v523_v42 = vpop.f32.mrb[4].mxu1 }
 0x173   : > { %v443_v43 = vadd.f32 %v1316_v23, %v442_v41  ;;  %v524_v44 = vadd.f32 %v1316_v23, %v523_v42  ;;  %v943_v45 = vpop.f32.mrb[5].mxu0  ;;  %v953_v46 = vpop.f32.mrb[5].mxu1 }
 0x174   : > { %v445_v47 = vpop.f32.mrb[6].mxu0  ;;  %v526_v48 = vpop.f32.mrb[6].mxu1 }
 0x175   : > { %v448_v49 = vmax.f32 %v443_v43, 0.0  ;;  %v529_v50 = vmax.f32 %v524_v44, 0.0  ;;  %v944_v51 = vpop.f32.mrb[7].mxu0  ;;  %v954_v52 = vpop.f32.mrb[7].mxu1 }
 0x177   : > { %v449_v55 = vpack.c.bf16 %v448_v49, %v448_v49  ;;  %v530_v27 = vpack.c.bf16 %v529_v50, %v529_v50 }
 0x179   : > { %v452_v56 = vsel %vm1325_vm10, %v449_v55, %v858_v53  ;;  %v533_v57 = vsel %vm1325_vm10, %v530_v27, %v864_v54 }
 0x17a   : > { %859 = vst [vmem:[%s1321_s7 + $0x8] sm:$0xf] %v452_v56  ;;  %865 = vst [vmem:[%s1321_s7 + $0xc] sm:$0xf] %v533_v57 }
 0x17e   : > { %v604_v58 = vpop.f32.mrb[8].mxu0 }
 0x17f   : > { %v605_v59 = vadd.f32 %v1316_v23, %v604_v58  ;;  %v963_v60 = vpop.f32.mrb[9].mxu0 }
 0x180   : > { %v607_v61 = vpop.f32.mrb[10].mxu0 }
 0x181   : > { %v610_v62 = vmax.f32 %v605_v59, 0.0  ;;  %v964_v63 = vpop.f32.mrb[11].mxu0 }
 0x183   : > { %v611_v4 = vpack.c.bf16 %v610_v62, %v610_v62 }
 0x184   : > { %v685_v5 = vpop.f32.mrb[8].mxu1 }
 0x185   : > { %v614_v8 = vsel %vm1325_vm10, %v611_v4, %v870_v3  ;;  %v686_v9 = vadd.f32 %v1316_v23, %v685_v5  ;;  %v973_v10 = vpop.f32.mrb[9].mxu1 }
 0x186   : > { %871 = vst [vmem:[%s1321_s7 + $0x10] sm:$0xf] %v614_v8  ;;  %v688_v11 = vpop.f32.mrb[10].mxu1 }
 0x187   : > { %v691_v29 = vmax.f32 %v686_v9, 0.0  ;;  %v974_v14 = vpop.f32.mrb[11].mxu1 }
 0x189   : > { %v692_v40 = vpack.c.bf16 %v691_v29, %v691_v29 }
 0x18a   : > { %v766_v16 = vpop.f32.mrb[12].mxu0 }
 0x18b   : > { %v695_v6 = vsel %vm1325_vm10, %v692_v40, %v876_v12  ;;  %v767_v17 = vadd.f32 %v1316_v23, %v766_v16  ;;  %v983_v18 = vpop.f32.mrb[13].mxu0 }
 0x18c   : > { %877 = vst [vmem:[%s1321_s7 + $0x14] sm:$0xf] %v695_v6  ;;  %v769_v19 = vpop.f32.mrb[14].mxu0 }
 0x18d   : > { %v772_v20 = vmax.f32 %v767_v17, 0.0  ;;  %v984_v21 = vpop.f32.mrb[15].mxu0 }
 0x18f   : > { %v773_v0 = vpack.c.bf16 %v772_v20, %v772_v20 }
 0x191   : > { %v776_v24 = vsel %vm1325_vm10, %v773_v0, %v882_v22 }
 0x192   : > { %883 = vst [vmem:[%s1321_s7 + $0x18] sm:$0xf] %v776_v24 }
 0x193 PF: > { %s13_s12 = sadd.s32 1, %s1085_s12  }
 0x194   : > { %p10_p4 = scmp.ge.s32.totalorder %s13_s12, 4  }
 0x196   :  { %12 = sbr.rel (!%p10_p4) target bundleno = 1 (0x1), region = 82 }

// kernel: double_conv_block_forward.3
= control target key start
LH: loop header
LB: loop body
LE: loop exit
PB: predicated region body
PF: predicated region fallthrough
CT: control target
= control target key end

     0   :  { %s1014_s12 = smov 0   ;;  %s1331_s0 = inlined_call_operand.vmem [shape: bf16[2,7,7,16], index: 0, kind: input, shape index: {}]   ;;  %s1332_s1 = inlined_call_operand.vmem [shape: bf16[144,32], index: 1, kind: input, shape index: {}]   ;;  %s1333_s2 = inlined_call_operand.vmem [shape: f32[1,32], index: 2, kind: input, shape index: {}]   ;;  %s1334_s3 = inlined_call_operand.vmem [shape: f32[2,5,5,32], index: 3, kind: output, shape index: {}]  }
   0x1 LB: > { %s879_s13 = sadd.s32 4294967295, %s984_s12   ;;  %p883_p0 = scmp.ge.s32.totalorder %s984_s12, 1  ;;  %s984_s12 = sphi %s1014_s12, %s13_s12  }
   0x2   : > { %p137_p1 = scmp.lt.s32.totalorder %s984_s12, 3 }
   0x4   : > { %p138_p2 = pnand %p883_p0, %p137_p1 }
   0x5   : > { %p161_p3 = scmp.lt.s32.totalorder (!%p138_p2), %s879_s13, 1  ;;  %v1025_v0 = vld [vmem:[%s1332_s1] sm:$0xff] (!%p138_p2)   ;;  %v986_v1 = vmov (!%p138_p2), 0   ;;  %v1035_v2 = vld [vmem:[%s1332_s1 + $0x8] sm:$0xff] (!%p138_p2)   ;;  %v1050_v3 = vld [vmem:[%s1332_s1 + $0x10] sm:$0xff] (!%p138_p2)   ;;  %s987_s24 = smov (!%p138_p2), 48  }
   0x6   : > { %141 = sbr.rel (%p138_p2) target bundleno = 439 (0x1b7), region = 32  ;;  %329 = vmatprep.subr.bf16.mxu0 (!%p138_p2), %v986_v1  ;;  %442 = vmatprep.subr.bf16.mxu1 (!%p138_p2), %v986_v1  ;;  %v1075_v15 = vld [vmem:[%s1332_s1 + $0x18] sm:$0xff] (!%p138_p2)   ;;  %s988_s27 = smov (!%p138_p2), 32   ;;  %v1092_v23 = vld [vmem:[%s1332_s1 + $0x20] sm:$0xff] (!%p138_p2)   ;;  %v1105_v30 = vld [vmem:[%s1332_s1 + $0x28] sm:$0xff] (!%p138_p2)   ;;  %vm243_vm0 = vcmask (!%p138_p2), 130048  }
   0x7   : > { %330 = vmatpush1.bf16.msra.mxu0 (!%p138_p2), %v1025_v0  ;;  %443 = vmatpush1.bf16.msra.mxu1 (!%p138_p2), %v1025_v0  ;;  %s989_s30 = smov (!%p138_p2), 64   ;;  %s990_s4 = smov (!%p138_p2), 16   ;;  %v1119_v37 = vld [vmem:[%s1332_s1 + $0x30] sm:$0xff] (!%p138_p2)   ;;  %v1131_v42 = vld [vmem:[%s1332_s1 + $0x38] sm:$0xff] (!%p138_p2)   ;;  %v1144_v48 = vld [vmem:[%s1332_s1 + $0x40] sm:$0xff] (!%p138_p2)   ;;  %vm247_vm1 = vcmask (!%p138_p2), 261120  }
   0x8   : > { %331 = vmatprep.subr.bf16.mxu0 (!%p138_p2), %v986_v1  ;;  %444 = vmatprep.subr.bf16.mxu1 (!%p138_p2), %v986_v1  ;;  %s991_s7 = smov (!%p138_p2), 96   ;;  %s992_s8 = smov (!%p138_p2), 80   ;;  %vm250_vm2 = vcmask (!%p138_p2), 392192   ;;  %vm253_vm3 = vcmask (!%p138_p2), 523264   ;;  %vm256_vm4 = vcmask (!%p138_p2), 654336   ;;  %vm259_vm5 = vcmask (!%p138_p2), 785408  }
   0x9   : > { %s993_s11 = smov (!%p138_p2), 112   ;;  %vm262_vm6 = vcmask (!%p138_p2), 916480   ;;  %vm370_vm7 = vcmask (!%p138_p2), 258048  }
   0xb   : > { %332 = vmatpush1.bf16.msra.mxu0 (!%p138_p2), %v1035_v2  ;;  %445 = vmatpush1.bf16.msra.mxu1 (!%p138_p2), %v1035_v2 }
   0xc   : > { %333 = vmatprep.subr.bf16.mxu0 (!%p138_p2), %v986_v1  ;;  %446 = vmatprep.subr.bf16.mxu1 (!%p138_p2), %v986_v1 }
   0xd   : > { %s1336_s13 = smov (!%p161_p3, %s879_s13), 1 }
   0xe   : > { %s936_s18 = smul.u32 28, %s1336_s13 }
   0xf   : > { %334 = vmatpush1.bf16.msra.mxu0 %v1050_v3  ;;  %447 = vmatpush1.bf16.msra.mxu1 %v1050_v3 }
  0x10   : > { %s1044_s21 = scalar_lea.vmem %s1331_s0, %s936_s18  ;;  %335 = vmatprep.subr.bf16.mxu0 %v986_v1  ;;  %448 = vmatprep.subr.bf16.mxu1 %v986_v1  ;;  %s937_s18 = smul.u32 40, %s1336_s13 }
  0x11   : > { %v954_v4 = vld [vmem:[%s1044_s21 + $0x4] ss:$0 sps:$4 sm:$0xff]   ;;  %v1055_v5 = vld [vmem:[%s1044_s21] sm:$0xf]  ;;  %v1062_v7 = vld [vmem:[%s1044_s21 + $0x8] ss:$0 sps:$4 sm:$0xff]  }
  0x12   : > { %v888_v6 = vcombine.low %v1055_v5, %v1055_v5  ;;  %v1065_v8 = vld [vmem:[%s1044_s21 + $0x4] sm:$0xf]  ;;  %214 = vrot.lane.b32.xlu1 %v954_v4, %s987_s24  ;;  %v217_v9 = vshrl.u32 %v954_v4, 16  ;;  %v219_v10 = vshll.u32 %v954_v4, 16  ;;  %v1069_v11 = vld [vmem:[%s1044_s21 + $0x8] sm:$0xf]  ;;  %s1316_s23 = scalar_lea.vmem %s1334_s3, %s937_s18 }
  0x13   : > { %v905_v17 = vcombine.low %v1065_v8, %v1065_v8  ;;  %v236_v19 = vshll.u32 %v1062_v7, 16  ;;  %v1086_v20 = vcombine.low %v1069_v11, %v1069_v11  ;;  %336 = vmatpush1.bf16.msra.mxu0 %v1075_v15  ;;  %449 = vmatpush1.bf16.msra.mxu1 %v1075_v15  ;;  %v225_v25 = vrot.slane %v954_v4, 1  ;;  %v959_v33 = vld [vmem:[%s1044_s21 + $0x8] ss:$0 sps:$4 sm:$0xff]   ;;  %v960_v41 = vld [vmem:[%s1044_s21 + $0xc] ss:$0 sps:$4 sm:$0xff]  }
  0x14   : > { %v208_v12 = vrot.slane %v888_v6, 1  ;;  %v200_v13 = vshrl.u32 %v888_v6, 16  ;;  %v202_v14 = vshll.u32 %v888_v6, 16  ;;  %v221_v16 = vrot.slane %v219_v10, 1  ;;  %337 = vmatprep.subr.bf16.mxu0 %v986_v1  ;;  %450 = vmatprep.subr.bf16.mxu1 %v986_v1  ;;  %v961_v50 = vld [vmem:[%s1044_s21 + $0xc] ss:$0 sps:$4 sm:$0xff]  }
  0x15   : > { %v382_v24 = vshll.u32 %v905_v17, 16  ;;  %v234_v26 = vshrl.u32 %v1062_v7, 16  ;;  %v238_v27 = vrot.slane %v236_v19, 1  ;;  %v495_v28 = vshll.u32 %v1086_v20, 16  ;;  %v1152_v53 = vld [vmem:[%s1044_s21 + $0xc] sm:$0xf] }
  0x16   : > { %209 = vrot.lane.b32.xlu0 %v208_v12, %s988_s27  ;;  %v204_v18 = vrot.slane %v202_v14, 1  ;;  %v222_v21 = vor.u32 %v221_v16, %v217_v9  ;;  %v388_v29 = vrot.slane %v905_v17, 1  ;;  %v380_v31 = vshrl.u32 %v905_v17, 16  ;;  %v1164_v59 = vld [vmem:[%s1044_s21 + $0x10] ss:$0 sps:$4 sm:$0xff]  }
  0x17   : > { %338 = vmatpush1.bf16.msra.mxu0 %v1092_v23  ;;  %451 = vmatpush1.bf16.msra.mxu1 %v1092_v23  ;;  %v384_v32 = vrot.slane %v382_v24, 1  ;;  %v239_v34 = vor.u32 %v238_v27, %v234_v26  ;;  %v493_v35 = vshrl.u32 %v1086_v20, 16  ;;  %v497_v36 = vrot.slane %v495_v28, 1  ;;  %v1168_v60 = vld [vmem:[%s1044_s21 + $0x10] sm:$0xf] }
  0x18   : > { %v205_v22 = vor.u32 %v204_v18, %v200_v13  ;;  %223 = vrot.lane.b32.xlu1 %v222_v21, %s989_s30  ;;  %339 = vmatprep.subr.bf16.mxu0 %v986_v1  ;;  %v399_v39 = vshll.u32 %v959_v33, 16  ;;  %v397_v43 = vshrl.u32 %v959_v33, 16  ;;  %v501_v45 = vrot.slane %v1086_v20, 1  ;;  %v965_v18 = vld [vmem:[%s1044_s21 + $0x10] ss:$0 sps:$4 sm:$0xff]  }
  0x19   : > { %452 = vmatprep.subr.bf16.mxu1 %v986_v1  ;;  %v385_v38 = vor.u32 %v384_v32, %v380_v31  ;;  %v498_v40 = vor.u32 %v497_v36, %v493_v35  ;;  %v512_v46 = vshll.u32 %v960_v41, 16  ;;  %v242_v47 = vrot.slane %v1062_v7, 1  ;;  %v966_v26 = vld [vmem:[%s1044_s21 + $0x14] ss:$0 sps:$4 sm:$0xff]  }
  0x1a   : > { %206 = vrot.lane.b32.xlu0 %v205_v22, %s990_s4  ;;  %v401_v44 = vrot.slane %v399_v39, 1  ;;  %v510_v51 = vshrl.u32 %v960_v41, 16  ;;  %v422_v54 = vrot.slane %v961_v50, 1  ;;  %v405_v55 = vrot.slane %v959_v33, 1 }
  0x1b   : > { %340 = vmatpush1.bf16.msra.mxu0 %v1105_v30  ;;  %453 = vmatpush1.bf16.msra.mxu1 %v1105_v30  ;;  %v514_v52 = vrot.slane %v512_v46, 1  ;;  %v416_v56 = vshll.u32 %v961_v50, 16  ;;  %v921_v57 = vcombine.low %v1152_v53, %v1152_v53  ;;  %v414_v61 = vshrl.u32 %v961_v50, 16 }
  0x1c   : > { %231 = vrot.lane.b32.xlu1 %v1062_v7, %s991_s7  ;;  %341 = vmatprep.subr.bf16.mxu0 %v986_v1  ;;  %v402_v49 = vor.u32 %v401_v44, %v397_v43  ;;  %v518_v4 = vrot.slane %v960_v41, 1  ;;  %v529_v6 = vshll.u32 %v1164_v59, 16  ;;  %v929_v7 = vcombine.low %v1168_v60, %v1168_v60 }
  0x1d   : > { %454 = vmatprep.subr.bf16.mxu1 %v986_v1  ;;  %901 = vmatprep.mubr.msk.bf16.mxu0 %vm243_vm0, %v242_v47  ;;  %v515_v58 = vor.u32 %v514_v52, %v510_v51  ;;  %v418_v62 = vrot.slane %v416_v56, 1  ;;  %v608_v63 = vshll.u32 %v921_v57, 16  ;;  %v606_v10 = vshrl.u32 %v921_v57, 16 }
  0x1e   : > { %226 = vrot.lane.b32.xlu0 %v225_v25, %s992_s8  ;;  %908 = vmatprep.mubr.msk.bf16.mxu1 %vm243_vm0, %v422_v54  ;;  %v527_v13 = vshrl.u32 %v1164_v59, 16  ;;  %v531_v14 = vrot.slane %v529_v6, 1  ;;  %v721_v16 = vshll.u32 %v929_v7, 16  ;;  %v719_v20 = vshrl.u32 %v929_v7, 16 }
  0x1f   : > { %342 = vmatpush1.bf16.msra.mxu0 %v1119_v37  ;;  %455 = vmatpush1.bf16.msra.mxu1 %v1119_v37  ;;  %v419_v9 = vor.u32 %v418_v62, %v414_v61  ;;  %v610_v12 = vrot.slane %v608_v63, 1  ;;  %v614_v22 = vrot.slane %v921_v57, 1  ;;  %v625_v24 = vshll.u32 %v965_v18, 16 }
  0x20   : > { %389 = vrot.lane.b32.xlu1 %v388_v29, %s988_s27  ;;  %343 = vmatprep.subr.bf16.mxu0 %v986_v1  ;;  %v532_v19 = vor.u32 %v531_v14, %v527_v13  ;;  %v723_v21 = vrot.slane %v721_v16, 1  ;;  %v623_v27 = vshrl.u32 %v965_v18, 16  ;;  %v727_v29 = vrot.slane %v929_v7, 1 }
  0x21   : > { %456 = vmatprep.subr.bf16.mxu1 %v986_v1  ;;  %v611_v17 = vor.u32 %v610_v12, %v606_v10  ;;  %v627_v28 = vrot.slane %v625_v24, 1  ;;  %v738_v31 = vshll.u32 %v966_v26, 16  ;;  %v631_v36 = vrot.slane %v965_v18, 1 }
  0x22   : > { %240 = vrot.lane.b32.xlu0 %v239_v34, %s993_s11  ;;  %v724_v25 = vor.u32 %v723_v21, %v719_v20  ;;  %v736_v34 = vshrl.u32 %v966_v26, 16  ;;  %v744_v44 = vrot.slane %v966_v26, 1  ;;  %v535_v7 = vrot.slane %v1164_v59, 1 }
  0x23   : > { %344 = vmatpush1.bf16.msra.mxu0 %v1131_v42  ;;  %457 = vmatpush1.bf16.msra.mxu1 %v1131_v42  ;;  %v628_v32 = vor.u32 %v627_v28, %v623_v27  ;;  %v740_v35 = vrot.slane %v738_v31, 1 }
  0x24   : > { %386 = vrot.lane.b32.xlu1 %v385_v38, %s990_s4  ;;  %345 = vmatprep.subr.bf16.mxu0 %v986_v1 }
  0x25   : > { %458 = vmatprep.subr.bf16.mxu1 %v986_v1  ;;  %v741_v39 = vor.u32 %v740_v35, %v736_v34 }
  0x26   : > { %499 = vrot.lane.b32.xlu0 %v498_v40, %s990_s4  ;;  %v1197_v40 = vld [vmem:[%s1044_s21 + $0x18] ss:$0 sps:$4 sm:$0xff]  }
  0x27   : > { %346 = vmatpush1.bf16.msra.mxu0 %v1144_v48  ;;  %459 = vmatpush1.bf16.msra.mxu1 %v1144_v48  ;;  %v753_v47 = vshrl.u32 %v1197_v40, 16 }
  0x28   : > { %394 = vrot.lane.b32.xlu1 %v959_v33, %s987_s24  ;;  %555 = vmatprep.subr.bf16.mxu0 %v986_v1  ;;  %v1190_v33 = vld [vmem:[%s1044_s21 + $0x14] ss:$0 sps:$4 sm:$0xff]  }
  0x29   : > { %668 = vmatprep.subr.bf16.mxu1 %v986_v1  ;;  %v642_v38 = vshll.u32 %v1190_v33, 16  ;;  %v648_v27 = vrot.slane %v1190_v33, 1 }
  0x2a   : > { %502 = vrot.lane.b32.xlu0 %v501_v45, %s988_s27  ;;  %v755_v45 = vshll.u32 %v1197_v40, 16 }
  0x2b   : > { %v644_v43 = vrot.slane %v642_v38, 1 }
  0x2c   : > { %403 = vrot.lane.b32.xlu1 %v402_v49, %s989_s30  ;;  %v757_v49 = vrot.slane %v755_v45, 1 }
  0x2e   : > { %507 = vrot.lane.b32.xlu0 %v960_v41, %s987_s24  ;;  %v640_v41 = vshrl.u32 %v1190_v33, 16 }
  0x30   : > { %406 = vrot.lane.b32.xlu1 %v405_v55, %s992_s8  ;;  %v645_v46 = vor.u32 %v644_v43, %v640_v41 }
  0x32   : > { %516 = vrot.lane.b32.xlu0 %v515_v58, %s989_s30 }
  0x34   : > { %411 = vrot.lane.b32.xlu1 %v961_v50, %s991_s7  ;;  %v758_v50 = vor.u32 %v757_v49, %v753_v47  ;;  %v761_v49 = vrot.slane %v1197_v40, 1 }
  0x36   : > { %519 = vrot.lane.b32.xlu0 %v518_v4, %s992_s8 }
  0x38   : > { %420 = vrot.lane.b32.xlu1 %v419_v9, %s993_s11 }
  0x3a   : > { %524 = vrot.lane.b32.xlu0 %v1164_v59, %s991_s7 }
  0x3c   : > { %612 = vrot.lane.b32.xlu1 %v611_v17, %s990_s4 }
  0x3e   : > { %533 = vrot.lane.b32.xlu0 %v532_v19, %s993_s11 }
  0x40   : > { %615 = vrot.lane.b32.xlu1 %v614_v22, %s988_s27 }
  0x42   : > { %725 = vrot.lane.b32.xlu0 %v724_v25, %s990_s4 }
  0x44   : > { %620 = vrot.lane.b32.xlu1 %v965_v18, %s987_s24 }
  0x46   : > { %728 = vrot.lane.b32.xlu0 %v727_v29, %s988_s27 }
  0x48   : > { %629 = vrot.lane.b32.xlu1 %v628_v32, %s989_s30 }
  0x4a   : > { %733 = vrot.lane.b32.xlu0 %v966_v26, %s987_s24 }
  0x4c   : > { %632 = vrot.lane.b32.xlu1 %v631_v36, %s992_s8 }
  0x4e   : > { %742 = vrot.lane.b32.xlu0 %v741_v39, %s989_s30 }
  0x50   : > { %637 = vrot.lane.b32.xlu1 %v1190_v33, %s991_s7 }
  0x52   : > { %745 = vrot.lane.b32.xlu0 %v744_v44, %s992_s8 }
  0x54   : > { %646 = vrot.lane.b32.xlu1 %v645_v46, %s993_s11 }
  0x56   : > { %750 = vrot.lane.b32.xlu0 %v1197_v40, %s991_s7 }
  0x5a   : > { %759 = vrot.lane.b32.xlu0 %v758_v50, %s993_s11 }
  0x84   : > { %v215_v51 = vpop.permute.xlu1 %214 }
  0x88   : > { %v210_v52 = vpop.permute.xlu0 %209 }
  0x8a   : > { %v224_v54 = vpop.permute.xlu1 %223 }
  0x8c   : > { %v207_v55 = vpop.permute.xlu0 %206 }
  0x8d   : > { %v246_v56 = vsel %vm243_vm0, %v1055_v5, %v207_v55 }
  0x8e   : > { %v249_v57 = vsel %vm247_vm1, %v246_v56, %v210_v52  ;;  %v232_v58 = vpop.permute.xlu1 %231 }
  0x8f   : > { %v252_v61 = vsel %vm250_vm2, %v249_v57, %v215_v51 }
  0x90   : > { %v255_v62 = vsel %vm253_vm3, %v252_v61, %v224_v54  ;;  %v227_v63 = vpop.permute.xlu0 %226 }
  0x91   : > { %v258_v4 = vsel %vm256_vm4, %v255_v62, %v227_v63 }
  0x92   : > { %v390_v6 = vpop.permute.xlu1 %389  ;;  %v261_v5 = vsel %vm259_vm5, %v258_v4, %v232_v58 }
  0x94   : > { %v241_v9 = vpop.permute.xlu0 %240 }
  0x95   : > { %v264_v10 = vsel %vm262_vm6, %v261_v5, %v241_v9 }
  0x96   : > { %362 = vmatmul.mubr.bf16.vlgmr.msra.gmra.mrb[0].mxu0 %v264_v10  ;;  %v387_v12 = vpop.permute.xlu1 %386 }
  0x97   : > { %556 = vmatpush1.bf16.msra.mxu0 %v1025_v0  ;;  %916 = vmatprep.mubr.msk.bf16.mxu0 %vm243_vm0, %v535_v7  ;;  %v425_v59 = vsel %vm243_vm0, %v1065_v8, %v387_v12 }
  0x98   : > { %v500_v13 = vpop.permute.xlu0 %499  ;;  %557 = vmatprep.subr.bf16.mxu0 %v986_v1  ;;  %v427_v19 = vsel %vm247_vm1, %v425_v59, %v390_v6 }
  0x99   : > { %v538_v34 = vsel %vm243_vm0, %v1069_v11, %v500_v13 }
  0x9a   : > { %v395_v14 = vpop.permute.xlu1 %394 }
  0x9b   : > { %558 = vmatpush1.bf16.msra.mxu0 %v1035_v2  ;;  %v429_v21 = vsel %vm250_vm2, %v427_v19, %v395_v14 }
  0x9c   : > { %v503_v16 = vpop.permute.xlu0 %502  ;;  %559 = vmatprep.subr.bf16.mxu0 %v986_v1 }
  0x9d   : > { %v540_v35 = vsel %vm247_vm1, %v538_v34, %v503_v16 }
  0x9e   : > { %v404_v17 = vpop.permute.xlu1 %403 }
  0x9f   : > { %560 = vmatpush1.bf16.msra.mxu0 %v1050_v3  ;;  %v431_v24 = vsel %vm253_vm3, %v429_v21, %v404_v17 }
  0xa0   : > { %v508_v18 = vpop.permute.xlu0 %507  ;;  %561 = vmatprep.subr.bf16.mxu0 %v986_v1 }
  0xa1   : > { %v542_v38 = vsel %vm250_vm2, %v540_v35, %v508_v18 }
  0xa2   : > { %v407_v20 = vpop.permute.xlu1 %406 }
  0xa3   : > { %562 = vmatpush1.bf16.msra.mxu0 %v1075_v15  ;;  %v433_v26 = vsel %vm256_vm4, %v431_v24, %v407_v20 }
  0xa4   : > { %v517_v22 = vpop.permute.xlu0 %516  ;;  %563 = vmatprep.subr.bf16.mxu0 %v986_v1 }
  0xa5   : > { %v544_v41 = vsel %vm253_vm3, %v542_v38, %v517_v22 }
  0xa6   : > { %v412_v8 = vpop.permute.xlu1 %411 }
  0xa7   : > { %564 = vmatpush1.bf16.msra.mxu0 %v1092_v23  ;;  %v435_v28 = vsel %vm259_vm5, %v433_v26, %v412_v8 }
  0xa8   : > { %v520_v25 = vpop.permute.xlu0 %519  ;;  %565 = vmatprep.subr.bf16.mxu0 %v986_v1 }
  0xa9   : > { %v546_v43 = vsel %vm256_vm4, %v544_v41, %v520_v25 }
  0xaa   : > { %v421_v29 = vpop.permute.xlu1 %420 }
  0xab   : > { %566 = vmatpush1.bf16.msra.mxu0 %v1105_v30  ;;  %v437_v32 = vsel %vm262_vm6, %v435_v28, %v421_v29 }
  0xac   : > { %v525_v31 = vpop.permute.xlu0 %524  ;;  %567 = vmatprep.subr.bf16.mxu0 %v986_v1  ;;  %475 = vmatmul.mubr.bf16.vlgmr.msra.gmra.mrb[0].mxu1 %v437_v32 }
  0xad   : > { %669 = vmatpush1.bf16.msra.mxu1 %v1025_v0  ;;  %924 = vmatprep.mubr.msk.bf16.mxu1 %vm243_vm0, %v648_v27  ;;  %v548_v46 = vsel %vm259_vm5, %v546_v43, %v525_v31 }
  0xae   : > { %670 = vmatprep.subr.bf16.mxu1 %v986_v1  ;;  %v613_v33 = vpop.permute.xlu1 %612 }
  0xaf   : > { %568 = vmatpush1.bf16.msra.mxu0 %v1119_v37  ;;  %v651_v40 = vsel %vm243_vm0, %v1152_v53, %v613_v33 }
  0xb0   : > { %v534_v36 = vpop.permute.xlu0 %533  ;;  %569 = vmatprep.subr.bf16.mxu0 %v986_v1 }
  0xb1   : > { %671 = vmatpush1.bf16.msra.mxu1 %v1035_v2  ;;  %v550_v50 = vsel %vm262_vm6, %v548_v46, %v534_v36 }
  0xb2   : > { %672 = vmatprep.subr.bf16.mxu1 %v986_v1  ;;  %v616_v11 = vpop.permute.xlu1 %615 }
  0xb3   : > { %570 = vmatpush1.bf16.msra.mxu0 %v1131_v42  ;;  %v653_v55 = vsel %vm247_vm1, %v651_v40, %v616_v11 }
  0xb4   : > { %v726_v39 = vpop.permute.xlu0 %725  ;;  %571 = vmatprep.subr.bf16.mxu0 %v986_v1 }
  0xb5   : > { %673 = vmatpush1.bf16.msra.mxu1 %v1050_v3  ;;  %v764_v44 = vsel %vm243_vm0, %v1168_v60, %v726_v39 }
  0xb6   : > { %674 = vmatprep.subr.bf16.mxu1 %v986_v1  ;;  %v621_v45 = vpop.permute.xlu1 %620 }
  0xb7   : > { %572 = vmatpush1.bf16.msra.mxu0 %v1144_v48  ;;  %v655_v53 = vsel %vm250_vm2, %v653_v55, %v621_v45 }
  0xb8   : > { %v729_v47 = vpop.permute.xlu0 %728  ;;  %781 = vmatprep.subr.bf16.mxu0 %v986_v1 }
  0xb9   : > { %v766_v51 = vsel %vm247_vm1, %v764_v44, %v729_v47  ;;  %675 = vmatpush1.bf16.msra.mxu1 %v1075_v15 }
  0xba   : > { %588 = vmatmul.mubr.bf16.vlgmr.msra.gmra.mrb[4].mxu0 %v550_v50  ;;  %676 = vmatprep.subr.bf16.mxu1 %v986_v1  ;;  %v630_v60 = vpop.permute.xlu1 %629 }
  0xbb   : > { %782 = vmatpush1.bf16.msra.mxu0 %v1025_v0  ;;  %932 = vmatprep.mubr.msk.bf16.mxu0 %vm243_vm0, %v761_v49  ;;  %v657_v61 = vsel %vm253_vm3, %v655_v53, %v630_v60 }
  0xbc   : > { %v734_v52 = vpop.permute.xlu0 %733  ;;  %783 = vmatprep.subr.bf16.mxu0 %v986_v1 }
  0xbd   : > { %v768_v54 = vsel %vm250_vm2, %v766_v51, %v734_v52  ;;  %677 = vmatpush1.bf16.msra.mxu1 %v1092_v23 }
  0xbe   : > { %678 = vmatprep.subr.bf16.mxu1 %v986_v1  ;;  %v633_v57 = vpop.permute.xlu1 %632 }
  0xbf   : > { %784 = vmatpush1.bf16.msra.mxu0 %v1035_v2  ;;  %v659_v4 = vsel %vm256_vm4, %v657_v61, %v633_v57 }
  0xc0   : > { %v743_v0 = vpop.permute.xlu0 %742  ;;  %785 = vmatprep.subr.bf16.mxu0 %v986_v1 }
  0xc1   : > { %v770_v56 = vsel %vm253_vm3, %v768_v54, %v743_v0  ;;  %679 = vmatpush1.bf16.msra.mxu1 %v1105_v30 }
  0xc2   : > { %680 = vmatprep.subr.bf16.mxu1 %v986_v1  ;;  %v638_v62 = vpop.permute.xlu1 %637 }
  0xc3   : > { %786 = vmatpush1.bf16.msra.mxu0 %v1050_v3 }
  0xc4   : > { %v746_v58 = vpop.permute.xlu0 %745  ;;  %787 = vmatprep.subr.bf16.mxu0 %v986_v1 }
  0xc5   : > { %v772_v2 = vsel %vm256_vm4, %v770_v56, %v746_v58  ;;  %681 = vmatpush1.bf16.msra.mxu1 %v1119_v37 }
  0xc6   : > { %682 = vmatprep.subr.bf16.mxu1 %v986_v1  ;;  %v647_v7 = vpop.permute.xlu1 %646 }
  0xc7   : > { %788 = vmatpush1.bf16.msra.mxu0 %v1075_v15  ;;  %v661_v15 = vsel %vm259_vm5, %v659_v4, %v638_v62 }
  0xc8   : > { %v751_v63 = vpop.permute.xlu0 %750  ;;  %789 = vmatprep.subr.bf16.mxu0 %v986_v1  ;;  %v663_v5 = vsel %vm262_vm6, %v661_v15, %v647_v7 }
  0xc9   : > { %v774_v3 = vsel %vm259_vm5, %v772_v2, %v751_v63  ;;  %683 = vmatpush1.bf16.msra.mxu1 %v1131_v42 }
  0xca   : > { %684 = vmatprep.subr.bf16.mxu1 %v986_v1 }
  0xcb   : > { %790 = vmatpush1.bf16.msra.mxu0 %v1092_v23  ;;  %v891_v23 = vld [vmem:[%s1333_s2] ss:$0 sm:$0xff] }
  0xcc   : > { %v760_v6 = vpop.permute.xlu0 %759  ;;  %791 = vmatprep.subr.bf16.mxu0 %v986_v1 }
  0xcd   : > { %v776_v9 = vsel %vm262_vm6, %v774_v3, %v760_v6  ;;  %685 = vmatpush1.bf16.msra.mxu1 %v1144_v48 }
  0xcf   : > { %792 = vmatpush1.bf16.msra.mxu0 %v1105_v30 }
  0xd0   : > { %793 = vmatprep.subr.bf16.mxu0 %v986_v1  ;;  %701 = vmatmul.mubr.bf16.vlgmr.msra.gmra.mrb[4].mxu1 %v663_v5 }
  0xd3   : > { %794 = vmatpush1.bf16.msra.mxu0 %v1119_v37 }
  0xd4   : > { %795 = vmatprep.subr.bf16.mxu0 %v986_v1 }
  0xd7   : > { %796 = vmatpush1.bf16.msra.mxu0 %v1131_v42 }
  0xd8   : > { %797 = vmatprep.subr.bf16.mxu0 %v986_v1 }
  0xdb   : > { %798 = vmatpush1.bf16.msra.mxu0 %v1144_v48 }
  0xde   : > { %814 = vmatmul.mubr.bf16.vlgmr.msra.gmra.mrb[8].mxu0 %v776_v9 }
 0x169   : > { %v363_v30 = vpop.f32.mrb[0].mxu0 }
 0x16a   : > { %v364_v10 = vadd.f32 %v891_v23, %v363_v30  ;;  %v365_v12 = vpop.f32.mrb[1].mxu0 }
 0x16b   : > { %v366_v1 = vpop.f32.mrb[2].mxu0 }
 0x16c   : > { %v369_v37 = vmax.f32 %v364_v10, 0.0  ;;  %v367_v42 = vpop.f32.mrb[3].mxu0 }
 0x16e   : > { %371 = vst.msk [vmem:[%s1316_s23] sm:$0x1f] %vm370_vm7, %v369_v37 }
 0x17f   : > { %v476_v48 = vpop.f32.mrb[0].mxu1 }
 0x180   : > { %v477_v13 = vadd.f32 %v891_v23, %v476_v48  ;;  %v478_v14 = vpop.f32.mrb[1].mxu1 }
 0x181   : > { %v479_v16 = vpop.f32.mrb[2].mxu1 }
 0x182   : > { %v482_v59 = vmax.f32 %v477_v13, 0.0  ;;  %v480_v17 = vpop.f32.mrb[3].mxu1 }
 0x184   : > { %909 = vst.msk [vmem:[%s1316_s23 + $0x8] sm:$0x1f] %vm370_vm7, %v482_v59 }
 0x18d   : > { %v589_v18 = vpop.f32.mrb[4].mxu0 }
 0x18e   : > { %v590_v19 = vadd.f32 %v891_v23, %v589_v18  ;;  %v591_v20 = vpop.f32.mrb[5].mxu0 }
 0x18f   : > { %v592_v21 = vpop.f32.mrb[6].mxu0 }
 0x190   : > { %v595_v22 = vmax.f32 %v590_v19, 0.0  ;;  %v593_v24 = vpop.f32.mrb[7].mxu0 }
 0x192   : > { %917 = vst.msk [vmem:[%s1316_s23 + $0x10] sm:$0x1f] %vm370_vm7, %v595_v22 }
 0x1a3   : > { %v702_v8 = vpop.f32.mrb[4].mxu1 }
 0x1a4   : > { %v703_v25 = vadd.f32 %v891_v23, %v702_v8  ;;  %v704_v26 = vpop.f32.mrb[5].mxu1 }
 0x1a5   : > { %v705_v27 = vpop.f32.mrb[6].mxu1 }
 0x1a6   : > { %v708_v28 = vmax.f32 %v703_v25, 0.0  ;;  %v706_v29 = vpop.f32.mrb[7].mxu1 }
 0x1a8   : > { %925 = vst.msk [vmem:[%s1316_s23 + $0x18] sm:$0x1f] %vm370_vm7, %v708_v28 }
 0x1b1   : > { %v815_v31 = vpop.f32.mrb[8].mxu0 }
 0x1b2   : > { %v816_v32 = vadd.f32 %v891_v23, %v815_v31  ;;  %v817_v34 = vpop.f32.mrb[9].mxu0 }
 0x1b3   : > { %v818_v33 = vpop.f32.mrb[10].mxu0 }
 0x1b4   : > { %v821_v35 = vmax.f32 %v816_v32, 0.0  ;;  %v819_v36 = vpop.f32.mrb[11].mxu0 }
 0x1b6   : > { %933 = vst.msk [vmem:[%s1316_s23 + $0x20] sm:$0x1f] %vm370_vm7, %v821_v35 }
 0x1b7 PF: > { %s13_s12 = sadd.s32 1, %s984_s12  }
 0x1b8   : > { %p10_p4 = scmp.ge.s32.totalorder %s13_s12, 4  }
 0x1ba   :  { %12 = sbr.rel (!%p10_p4) target bundleno = 1 (0x1), region = 72 }

</bundles_post_ra>
